<compile_context>
chip_gen: v7x
topology: tpu7x:2x2x1
jax: 0.10.0
libtpu: 0.0.40
codegen_flags: <defaults>
</compile_context>

<pallas_src>
import functools
import math

import jax
import jax.numpy as jnp
import numpy as np
from jax.experimental import pallas as pl
from jax.experimental.pallas import tpu as pltpu

# ---------------- small ViT config (ViT-Base structure at tiny sizes) ----------------
NUM_CLASSES = 10
IMG = 16          # image height/width
PATCH = 8         # patch size
CHANNELS = 3      # RGB, as ViT expects
HIDDEN = 32       # hidden size
NUM_HEADS = 4
HEAD_DIM = HIDDEN // NUM_HEADS
MLP = 64          # intermediate size
LAYERS = 2        # encoder depth
LN_EPS = 1e-12    # HF ViTConfig.layer_norm_eps

N_PATCHES = (IMG // PATCH) ** 2
SEQ = N_PATCHES + 1  # +1 for CLS token


# ---------------- in-kernel helpers ----------------
def _layer_norm(x, g, b):
    mu = jnp.mean(x, axis=-1, keepdims=True)
    var = jnp.mean(jnp.square(x - mu), axis=-1, keepdims=True)
    return (x - mu) * jax.lax.rsqrt(var + LN_EPS) * g + b


def _gelu(x):
    # TODO(synk): HF ViT uses exact erf-GELU; tanh approximation used for a safe Mosaic lowering.
    c = math.sqrt(2.0 / math.pi)
    return 0.5 * x * (1.0 + jnp.tanh(c * (x + 0.044715 * x * x * x)))


# ---------------- fused forward kernel ----------------
def _fused_vit_kernel(
    batch,
    # inputs
    patches_ref, pw_ref, pb_ref, cls_ref, pos_ref, bias_ref,
    ln1g_ref, ln1b_ref, wq_ref, bq_ref, wk_ref, bk_ref, wv_ref, bv_ref,
    wo_ref, bo_ref, ln2g_ref, ln2b_ref, w1_ref, b1_ref, w2_ref, b2_ref,
    lnfg_ref, lnfb_ref, cw_ref, cb_ref,
    # outputs
    out_ref,
    # scratch
    x_scr, ctx_scr,
):
    f32 = jnp.float32

    # ---- patch embedding: (B*NP, C*P*P) @ (C*P*P, H) ----
    emb = jnp.dot(patches_ref[...], pw_ref[...], preferred_element_type=f32) + pb_ref[...]

    # ---- prepend CLS token + positional embedding, building (B*SEQ, H) token slab ----
    pos = pos_ref[...]                       # (SEQ, H)  (read once)
    cls_row = cls_ref[...] + pos[0:1, :]     # (1, H)
    for b in range(batch):
        x_scr[b * SEQ:b * SEQ + 1, :] = cls_row
        x_scr[b * SEQ + 1:(b + 1) * SEQ, :] = (
            emb[b * N_PATCHES:(b + 1) * N_PATCHES, :] + pos[1:SEQ, :]
        )
    x = x_scr[...]                           # (B*SEQ, H)

    attn_bias = bias_ref[...]                # (B*SEQ, B*SEQ): 0 same-batch, -1e30 cross-batch
    scale = 1.0 / math.sqrt(HEAD_DIM)

    # ---- encoder layers (static unroll; params stacked on leading LAYERS dim) ----
    for li in range(LAYERS):
        # --- self-attention block (pre-LN) ---
        h = _layer_norm(x, ln1g_ref[li], ln1b_ref[li])
        q = (jnp.dot(h, wq_ref[li], preferred_element_type=f32) + bq_ref[li]) * scale
        k = jnp.dot(h, wk_ref[li], preferred_element_type=f32) + bk_ref[li]
        v = jnp.dot(h, wv_ref[li], preferred_element_type=f32) + bv_ref[li]

        for hd in range(NUM_HEADS):
            sl = slice(hd * HEAD_DIM, (hd + 1) * HEAD_DIM)
            qh, kh, vh = q[:, sl], k[:, sl], v[:, sl]
            # scores = qh @ kh^T  (contract on head_dim, no explicit transpose)
            s = jax.lax.dot_general(
                qh, kh, (((1,), (1,)), ((), ())), preferred_element_type=f32
            ) + attn_bias
            m = jnp.max(s, axis=-1, keepdims=True)
            e = jnp.exp(s - m)
            p = e * pl.reciprocal(jnp.sum(e, axis=-1, keepdims=True), approx=True)
            # write this head's context into its lane sub-range of the scratch
            ctx_scr[:, sl] = jnp.dot(p, vh, preferred_element_type=f32)

        # single K=HIDDEN output projection on the re-assembled context
        x = x + jnp.dot(ctx_scr[...], wo_ref[li], preferred_element_type=f32) + bo_ref[li]

        # --- MLP block (pre-LN) ---
        h2 = _layer_norm(x, ln2g_ref[li], ln2b_ref[li])
        f = _gelu(jnp.dot(h2, w1_ref[li], preferred_element_type=f32) + b1_ref[li])
        x = x + jnp.dot(f, w2_ref[li], preferred_element_type=f32) + b2_ref[li]

    # ---- final LayerNorm + classifier (LN is per-token; compute on all rows, emit CLS rows) ----
    xn = _layer_norm(x, lnfg_ref[...], lnfb_ref[...])
    logits_all = jnp.dot(xn, cw_ref[...], preferred_element_type=f32) + cb_ref[...]
    for b in range(batch):
        out_ref[b:b + 1, :] = logits_all[b * SEQ:b * SEQ + 1, :]


# ---------------- parameters (deterministic synthetic init, layer-stacked) ----------------
def init_params(key):
    def nrm(k, shape, scale=0.02):
        return scale * jax.random.normal(k, shape, jnp.float32)

    keys = iter(jax.random.split(key, 32))
    return {
        "patch_w": nrm(next(keys), (CHANNELS * PATCH * PATCH, HIDDEN)),
        "patch_b": jnp.zeros((1, HIDDEN), jnp.float32),
        "cls": nrm(next(keys), (1, HIDDEN)),
        "pos": nrm(next(keys), (SEQ, HIDDEN)),
        # per-layer params stacked on a leading LAYERS axis
        "ln1_g": jnp.ones((LAYERS, 1, HIDDEN), jnp.float32),
        "ln1_b": jnp.zeros((LAYERS, 1, HIDDEN), jnp.float32),
        "wq": nrm(next(keys), (LAYERS, HIDDEN, HIDDEN)),
        "bq": jnp.zeros((LAYERS, 1, HIDDEN), jnp.float32),
        "wk": nrm(next(keys), (LAYERS, HIDDEN, HIDDEN)),
        "bk": jnp.zeros((LAYERS, 1, HIDDEN), jnp.float32),
        "wv": nrm(next(keys), (LAYERS, HIDDEN, HIDDEN)),
        "bv": jnp.zeros((LAYERS, 1, HIDDEN), jnp.float32),
        "wo": nrm(next(keys), (LAYERS, HIDDEN, HIDDEN)),
        "bo": jnp.zeros((LAYERS, 1, HIDDEN), jnp.float32),
        "ln2_g": jnp.ones((LAYERS, 1, HIDDEN), jnp.float32),
        "ln2_b": jnp.zeros((LAYERS, 1, HIDDEN), jnp.float32),
        "w1": nrm(next(keys), (LAYERS, HIDDEN, MLP)),
        "b1": jnp.zeros((LAYERS, 1, MLP), jnp.float32),
        "w2": nrm(next(keys), (LAYERS, MLP, HIDDEN)),
        "b2": jnp.zeros((LAYERS, 1, HIDDEN), jnp.float32),
        # final LN + classifier
        "ln_f_g": jnp.ones((1, HIDDEN), jnp.float32),
        "ln_f_b": jnp.zeros((1, HIDDEN), jnp.float32),
        "cls_w": nrm(next(keys), (HIDDEN, NUM_CLASSES)),
        "cls_b": jnp.zeros((1, NUM_CLASSES), jnp.float32),
    }


# ---------------- forward (single fused pallas_call) ----------------
def vit_forward(x, params):
    """x: (B, C, H, W) float32 in NCHW (PyTorch convention)."""
    b, c, h_im, w_im = x.shape
    nh, nw = h_im // PATCH, w_im // PATCH

    # patchify (glue): conv(kernel=P, stride=P) == per-patch flatten + linear
    patches = x.reshape(b, c, nh, PATCH, nw, PATCH)
    patches = patches.transpose(0, 2, 4, 1, 3, 5)             # (B, nh, nw, C, P, P)
    patches = patches.reshape(b * nh * nw, c * PATCH * PATCH)  # (B*NP, C*P*P)

    # block-diagonal additive attention bias (0 within a batch element, -1e30 across);
    # static given (b, SEQ), built at trace time.
    tok = np.arange(b * SEQ) // SEQ
    attn_bias = jnp.asarray(
        np.where(tok[:, None] == tok[None, :], 0.0, -1e30).astype(np.float32)
    )

    kernel = functools.partial(_fused_vit_kernel, b)
    logits = pl.pallas_call(
        kernel,
        out_shape=jax.ShapeDtypeStruct((b, NUM_CLASSES), jnp.float32),
        scratch_shapes=[
            pltpu.VMEM((b * SEQ, HIDDEN), jnp.float32),   # token slab
            pltpu.VMEM((b * SEQ, HIDDEN), jnp.float32),   # attention context
        ],
    )(
        patches, params["patch_w"], params["patch_b"], params["cls"], params["pos"],
        attn_bias,
        params["ln1_g"], params["ln1_b"],
        params["wq"], params["bq"], params["wk"], params["bk"],
        params["wv"], params["bv"], params["wo"], params["bo"],
        params["ln2_g"], params["ln2_b"],
        params["w1"], params["b1"], params["w2"], params["b2"],
        params["ln_f_g"], params["ln_f_b"], params["cls_w"], params["cls_b"],
    )
    return logits  # (B, NUM_CLASSES)


if __name__ == "__main__":
    key = jax.random.PRNGKey(0)
    k_param, k_x = jax.random.split(key)
    params = init_params(k_param)
    x = jax.random.normal(k_x, (2, CHANNELS, IMG, IMG), jnp.float32)

    logits = jax.jit(vit_forward)(x, params)
    logits = jax.block_until_ready(logits)
    assert logits.shape == (2, NUM_CLASSES)
    assert bool(jnp.all(jnp.isfinite(logits)))
    print("KERNEL_OK")
</pallas_src>

<mosaic_0001>
module attributes {stable_mosaic.version = 11 : i64} {
  func.func @_fused_vit_kernel(%arg0: memref<8x192xf32, #tpu.memory_space<vmem>>, %arg1: memref<192x32xf32, #tpu.memory_space<vmem>>, %arg2: memref<1x32xf32, #tpu.memory_space<vmem>>, %arg3: memref<1x32xf32, #tpu.memory_space<vmem>>, %arg4: memref<5x32xf32, #tpu.memory_space<vmem>>, %arg5: memref<10x10xf32, #tpu.memory_space<vmem>>, %arg6: memref<2x1x32xf32, #tpu.memory_space<vmem>>, %arg7: memref<2x1x32xf32, #tpu.memory_space<vmem>>, %arg8: memref<2x32x32xf32, #tpu.memory_space<vmem>>, %arg9: memref<2x1x32xf32, #tpu.memory_space<vmem>>, %arg10: memref<2x32x32xf32, #tpu.memory_space<vmem>>, %arg11: memref<2x1x32xf32, #tpu.memory_space<vmem>>, %arg12: memref<2x32x32xf32, #tpu.memory_space<vmem>>, %arg13: memref<2x1x32xf32, #tpu.memory_space<vmem>>, %arg14: memref<2x32x32xf32, #tpu.memory_space<vmem>>, %arg15: memref<2x1x32xf32, #tpu.memory_space<vmem>>, %arg16: memref<2x1x32xf32, #tpu.memory_space<vmem>>, %arg17: memref<2x1x32xf32, #tpu.memory_space<vmem>>, %arg18: memref<2x32x64xf32, #tpu.memory_space<vmem>>, %arg19: memref<2x1x64xf32, #tpu.memory_space<vmem>>, %arg20: memref<2x64x32xf32, #tpu.memory_space<vmem>>, %arg21: memref<2x1x32xf32, #tpu.memory_space<vmem>>, %arg22: memref<1x32xf32, #tpu.memory_space<vmem>>, %arg23: memref<1x32xf32, #tpu.memory_space<vmem>>, %arg24: memref<32x10xf32, #tpu.memory_space<vmem>>, %arg25: memref<1x10xf32, #tpu.memory_space<vmem>>, %arg26: memref<2x10xf32, #tpu.memory_space<vmem>>, %arg27: memref<10x32xf32, #tpu.memory_space<vmem>>, %arg28: memref<10x32xf32, #tpu.memory_space<vmem>>) attributes {dimension_semantics = [], scalar_prefetch = 0 : i64, scratch_operands = 2 : i64, tpu.core_type = #tpu.core_type<tc>} {
    %c0 = arith.constant 0 : index
    %c0_0 = arith.constant 0 : index
    %0 = vector.load %arg0[%c0, %c0_0] : memref<8x192xf32, #tpu.memory_space<vmem>>, vector<8x192xf32>
    %c0_1 = arith.constant 0 : index
    %c0_2 = arith.constant 0 : index
    %1 = vector.load %arg1[%c0_1, %c0_2] : memref<192x32xf32, #tpu.memory_space<vmem>>, vector<192x32xf32>
    %cst = arith.constant dense<0.000000e+00> : vector<8x32xf32>
    %2 = tpu.matmul %0, %1, %cst {dimension_numbers = #tpu.dot_dimension_numbers<[1], [0], [0], [1], [0, 0, 1, 1], [], []>} : vector<8x192xf32>, vector<192x32xf32>, vector<8x32xf32> -> vector<8x32xf32>
    %c0_3 = arith.constant 0 : index
    %c0_4 = arith.constant 0 : index
    %3 = vector.load %arg2[%c0_3, %c0_4] : memref<1x32xf32, #tpu.memory_space<vmem>>, vector<1x32xf32>
    %4 = vector.broadcast %3 : vector<1x32xf32> to vector<8x32xf32>
    %5 = arith.addf %2, %4 : vector<8x32xf32>
    %c0_5 = arith.constant 0 : index
    %c0_6 = arith.constant 0 : index
    %6 = vector.load %arg4[%c0_5, %c0_6] : memref<5x32xf32, #tpu.memory_space<vmem>>, vector<5x32xf32>
    %c0_7 = arith.constant 0 : index
    %c0_8 = arith.constant 0 : index
    %7 = vector.load %arg3[%c0_7, %c0_8] : memref<1x32xf32, #tpu.memory_space<vmem>>, vector<1x32xf32>
    %8 = vector.extract_strided_slice %6 {offsets = [0, 0], sizes = [1, 32], strides = [1, 1]} : vector<5x32xf32> to vector<1x32xf32>
    %9 = arith.addf %7, %8 : vector<1x32xf32>
    %c0_9 = arith.constant 0 : index
    %c0_10 = arith.constant 0 : index
    %10 = vector.load %arg27[%c0_9, %c0_10] : memref<10x32xf32, #tpu.memory_space<vmem>>, vector<1x32xf32>
    tpu.vector_store %arg27[%c0_9, %c0_10], %9 {strides = array<i32>} : memref<10x32xf32, #tpu.memory_space<vmem>>, vector<1x32xf32>,
    %11 = vector.extract_strided_slice %5 {offsets = [0, 0], sizes = [4, 32], strides = [1, 1]} : vector<8x32xf32> to vector<4x32xf32>
    %12 = vector.extract_strided_slice %6 {offsets = [1, 0], sizes = [4, 32], strides = [1, 1]} : vector<5x32xf32> to vector<4x32xf32>
    %13 = arith.addf %11, %12 : vector<4x32xf32>
    %c1 = arith.constant 1 : index
    %c0_11 = arith.constant 0 : index
    %14 = vector.load %arg27[%c1, %c0_11] : memref<10x32xf32, #tpu.memory_space<vmem>>, vector<4x32xf32>
    tpu.vector_store %arg27[%c1, %c0_11], %13 {strides = array<i32>} : memref<10x32xf32, #tpu.memory_space<vmem>>, vector<4x32xf32>,
    %c5 = arith.constant 5 : index
    %c0_12 = arith.constant 0 : index
    %15 = vector.load %arg27[%c5, %c0_12] : memref<10x32xf32, #tpu.memory_space<vmem>>, vector<1x32xf32>
    tpu.vector_store %arg27[%c5, %c0_12], %9 {strides = array<i32>} : memref<10x32xf32, #tpu.memory_space<vmem>>, vector<1x32xf32>,
    %16 = vector.extract_strided_slice %5 {offsets = [4, 0], sizes = [4, 32], strides = [1, 1]} : vector<8x32xf32> to vector<4x32xf32>
    %17 = vector.extract_strided_slice %6 {offsets = [1, 0], sizes = [4, 32], strides = [1, 1]} : vector<5x32xf32> to vector<4x32xf32>
    %18 = arith.addf %16, %17 : vector<4x32xf32>
    %c6 = arith.constant 6 : index
    %c0_13 = arith.constant 0 : index
    %19 = vector.load %arg27[%c6, %c0_13] : memref<10x32xf32, #tpu.memory_space<vmem>>, vector<4x32xf32>
    tpu.vector_store %arg27[%c6, %c0_13], %18 {strides = array<i32>} : memref<10x32xf32, #tpu.memory_space<vmem>>, vector<4x32xf32>,
    %c0_14 = arith.constant 0 : index
    %c0_15 = arith.constant 0 : index
    %20 = vector.load %arg27[%c0_14, %c0_15] : memref<10x32xf32, #tpu.memory_space<vmem>>, vector<10x32xf32>
    %c0_16 = arith.constant 0 : index
    %c0_17 = arith.constant 0 : index
    %21 = vector.load %arg5[%c0_16, %c0_17] : memref<10x10xf32, #tpu.memory_space<vmem>>, vector<10x10xf32>
    %c0_18 = arith.constant 0 : index
    %c0_19 = arith.constant 0 : index
    %c0_20 = arith.constant 0 : index
    %22 = vector.load %arg6[%c0_18, %c0_19, %c0_20] : memref<2x1x32xf32, #tpu.memory_space<vmem>>, vector<1x1x32xf32>
    %23 = vector.shape_cast %22 : vector<1x1x32xf32> to vector<1x32xf32>
    %c0_21 = arith.constant 0 : index
    %c0_22 = arith.constant 0 : index
    %c0_23 = arith.constant 0 : index
    %24 = vector.load %arg7[%c0_21, %c0_22, %c0_23] : memref<2x1x32xf32, #tpu.memory_space<vmem>>, vector<1x1x32xf32>
    %25 = vector.shape_cast %24 : vector<1x1x32xf32> to vector<1x32xf32>
    %cst_24 = arith.constant dense<0.000000e+00> : vector<10xf32>
    %26 = vector.multi_reduction <add>, %20, %cst_24 [1] : vector<10x32xf32> to vector<10xf32>
    %27 = vector.shape_cast %26 : vector<10xf32> to vector<10x1xf32>
    %cst_25 = arith.constant 3.200000e+01 : f32
    %28 = vector.broadcast %cst_25 : f32 to vector<10x1xf32>
    %29 = arith.divf %27, %28 : vector<10x1xf32>
    %30 = vector.broadcast %29 : vector<10x1xf32> to vector<10x32xf32>
    %31 = arith.subf %20, %30 : vector<10x32xf32>
    %32 = arith.mulf %31, %31 : vector<10x32xf32>
    %cst_26 = arith.constant dense<0.000000e+00> : vector<10xf32>
    %33 = vector.multi_reduction <add>, %32, %cst_26 [1] : vector<10x32xf32> to vector<10xf32>
    %34 = vector.shape_cast %33 : vector<10xf32> to vector<10x1xf32>
    %cst_27 = arith.constant 3.200000e+01 : f32
    %35 = vector.broadcast %cst_27 : f32 to vector<10x1xf32>
    %36 = arith.divf %34, %35 : vector<10x1xf32>
    %37 = vector.broadcast %29 : vector<10x1xf32> to vector<10x32xf32>
    %38 = arith.subf %20, %37 : vector<10x32xf32>
    %cst_28 = arith.constant 9.99999996E-13 : f32
    %39 = vector.broadcast %cst_28 : f32 to vector<10x1xf32>
    %40 = arith.addf %36, %39 : vector<10x1xf32>
    %41 = math.rsqrt %40 : vector<10x1xf32>
    %42 = vector.broadcast %41 : vector<10x1xf32> to vector<10x32xf32>
    %43 = arith.mulf %38, %42 : vector<10x32xf32>
    %44 = vector.broadcast %23 : vector<1x32xf32> to vector<10x32xf32>
    %45 = arith.mulf %43, %44 : vector<10x32xf32>
    %46 = vector.broadcast %25 : vector<1x32xf32> to vector<10x32xf32>
    %47 = arith.addf %45, %46 : vector<10x32xf32>
    %c0_29 = arith.constant 0 : index
    %c0_30 = arith.constant 0 : index
    %c0_31 = arith.constant 0 : index
    %48 = vector.load %arg8[%c0_29, %c0_30, %c0_31] : memref<2x32x32xf32, #tpu.memory_space<vmem>>, vector<1x32x32xf32>
    %49 = vector.shape_cast %48 : vector<1x32x32xf32> to vector<32x32xf32>
    %cst_32 = arith.constant dense<0.000000e+00> : vector<10x32xf32>
    %50 = tpu.matmul %47, %49, %cst_32 {dimension_numbers = #tpu.dot_dimension_numbers<[1], [0], [0], [1], [0, 0, 1, 1], [], []>} : vector<10x32xf32>, vector<32x32xf32>, vector<10x32xf32> -> vector<10x32xf32>
    %c0_33 = arith.constant 0 : index
    %c0_34 = arith.constant 0 : index
    %c0_35 = arith.constant 0 : index
    %51 = vector.load %arg9[%c0_33, %c0_34, %c0_35] : memref<2x1x32xf32, #tpu.memory_space<vmem>>, vector<1x1x32xf32>
    %52 = vector.shape_cast %51 : vector<1x1x32xf32> to vector<1x32xf32>
    %53 = vector.broadcast %52 : vector<1x32xf32> to vector<10x32xf32>
    %54 = arith.addf %50, %53 : vector<10x32xf32>
    %cst_36 = arith.constant 0.353553385 : f32
    %55 = vector.broadcast %cst_36 : f32 to vector<10x32xf32>
    %56 = arith.mulf %54, %55 : vector<10x32xf32>
    %c0_37 = arith.constant 0 : index
    %c0_38 = arith.constant 0 : index
    %c0_39 = arith.constant 0 : index
    %57 = vector.load %arg10[%c0_37, %c0_38, %c0_39] : memref<2x32x32xf32, #tpu.memory_space<vmem>>, vector<1x32x32xf32>
    %58 = vector.shape_cast %57 : vector<1x32x32xf32> to vector<32x32xf32>
    %cst_40 = arith.constant dense<0.000000e+00> : vector<10x32xf32>
    %59 = tpu.matmul %47, %58, %cst_40 {dimension_numbers = #tpu.dot_dimension_numbers<[1], [0], [0], [1], [0, 0, 1, 1], [], []>} : vector<10x32xf32>, vector<32x32xf32>, vector<10x32xf32> -> vector<10x32xf32>
    %c0_41 = arith.constant 0 : index
    %c0_42 = arith.constant 0 : index
    %c0_43 = arith.constant 0 : index
    %60 = vector.load %arg11[%c0_41, %c0_42, %c0_43] : memref<2x1x32xf32, #tpu.memory_space<vmem>>, vector<1x1x32xf32>
    %61 = vector.shape_cast %60 : vector<1x1x32xf32> to vector<1x32xf32>
    %62 = vector.broadcast %61 : vector<1x32xf32> to vector<10x32xf32>
    %63 = arith.addf %59, %62 : vector<10x32xf32>
    %c0_44 = arith.constant 0 : index
    %c0_45 = arith.constant 0 : index
    %c0_46 = arith.constant 0 : index
    %64 = vector.load %arg12[%c0_44, %c0_45, %c0_46] : memref<2x32x32xf32, #tpu.memory_space<vmem>>, vector<1x32x32xf32>
    %65 = vector.shape_cast %64 : vector<1x32x32xf32> to vector<32x32xf32>
    %cst_47 = arith.constant dense<0.000000e+00> : vector<10x32xf32>
    %66 = tpu.matmul %47, %65, %cst_47 {dimension_numbers = #tpu.dot_dimension_numbers<[1], [0], [0], [1], [0, 0, 1, 1], [], []>} : vector<10x32xf32>, vector<32x32xf32>, vector<10x32xf32> -> vector<10x32xf32>
    %c0_48 = arith.constant 0 : index
    %c0_49 = arith.constant 0 : index
    %c0_50 = arith.constant 0 : index
    %67 = vector.load %arg13[%c0_48, %c0_49, %c0_50] : memref<2x1x32xf32, #tpu.memory_space<vmem>>, vector<1x1x32xf32>
    %68 = vector.shape_cast %67 : vector<1x1x32xf32> to vector<1x32xf32>
    %69 = vector.broadcast %68 : vector<1x32xf32> to vector<10x32xf32>
    %70 = arith.addf %66, %69 : vector<10x32xf32>
    %71 = vector.extract_strided_slice %56 {offsets = [0, 0], sizes = [10, 8], strides = [1, 1]} : vector<10x32xf32> to vector<10x8xf32>
    %72 = vector.extract_strided_slice %63 {offsets = [0, 0], sizes = [10, 8], strides = [1, 1]} : vector<10x32xf32> to vector<10x8xf32>
    %73 = vector.extract_strided_slice %70 {offsets = [0, 0], sizes = [10, 8], strides = [1, 1]} : vector<10x32xf32> to vector<10x8xf32>
    %cst_51 = arith.constant dense<0.000000e+00> : vector<10x10xf32>
    %74 = tpu.matmul %71, %72, %cst_51 {dimension_numbers = #tpu.dot_dimension_numbers<[1], [1], [0], [0], [0, 0, 1, 0], [], []>} : vector<10x8xf32>, vector<10x8xf32>, vector<10x10xf32> -> vector<10x10xf32>
    %75 = arith.addf %74, %21 : vector<10x10xf32>
    %cst_52 = arith.constant dense<0xFF800000> : vector<10xf32>
    %76 = vector.multi_reduction <maximumf>, %75, %cst_52 [1] : vector<10x10xf32> to vector<10xf32>
    %77 = vector.shape_cast %76 : vector<10xf32> to vector<10x1xf32>
    %78 = vector.broadcast %77 : vector<10x1xf32> to vector<10x10xf32>
    %79 = arith.subf %75, %78 : vector<10x10xf32>
    %80 = math.exp %79 : vector<10x10xf32>
    %cst_53 = arith.constant dense<0.000000e+00> : vector<10xf32>
    %81 = vector.multi_reduction <add>, %80, %cst_53 [1] : vector<10x10xf32> to vector<10xf32>
    %82 = vector.shape_cast %81 : vector<10xf32> to vector<10x1xf32>
    %83 = tpu.reciprocal %82 {approx = true} : vector<10x1xf32> -> vector<10x1xf32>
    %84 = vector.broadcast %83 : vector<10x1xf32> to vector<10x10xf32>
    %85 = arith.mulf %80, %84 : vector<10x10xf32>
    %cst_54 = arith.constant dense<0.000000e+00> : vector<10x8xf32>
    %86 = tpu.matmul %85, %73, %cst_54 {dimension_numbers = #tpu.dot_dimension_numbers<[1], [0], [0], [1], [0, 0, 1, 1], [], []>} : vector<10x10xf32>, vector<10x8xf32>, vector<10x8xf32> -> vector<10x8xf32>
    %c0_55 = arith.constant 0 : index
    %c0_56 = arith.constant 0 : index
    %87 = vector.load %arg28[%c0_55, %c0_56] : memref<10x32xf32, #tpu.memory_space<vmem>>, vector<10x8xf32>
    tpu.vector_store %arg28[%c0_55, %c0_56], %86 {strides = array<i32>} : memref<10x32xf32, #tpu.memory_space<vmem>>, vector<10x8xf32>,
    %88 = vector.extract_strided_slice %56 {offsets = [0, 8], sizes = [10, 8], strides = [1, 1]} : vector<10x32xf32> to vector<10x8xf32>
    %89 = vector.extract_strided_slice %63 {offsets = [0, 8], sizes = [10, 8], strides = [1, 1]} : vector<10x32xf32> to vector<10x8xf32>
    %90 = vector.extract_strided_slice %70 {offsets = [0, 8], sizes = [10, 8], strides = [1, 1]} : vector<10x32xf32> to vector<10x8xf32>
    %cst_57 = arith.constant dense<0.000000e+00> : vector<10x10xf32>
    %91 = tpu.matmul %88, %89, %cst_57 {dimension_numbers = #tpu.dot_dimension_numbers<[1], [1], [0], [0], [0, 0, 1, 0], [], []>} : vector<10x8xf32>, vector<10x8xf32>, vector<10x10xf32> -> vector<10x10xf32>
    %92 = arith.addf %91, %21 : vector<10x10xf32>
    %cst_58 = arith.constant dense<0xFF800000> : vector<10xf32>
    %93 = vector.multi_reduction <maximumf>, %92, %cst_58 [1] : vector<10x10xf32> to vector<10xf32>
    %94 = vector.shape_cast %93 : vector<10xf32> to vector<10x1xf32>
    %95 = vector.broadcast %94 : vector<10x1xf32> to vector<10x10xf32>
    %96 = arith.subf %92, %95 : vector<10x10xf32>
    %97 = math.exp %96 : vector<10x10xf32>
    %cst_59 = arith.constant dense<0.000000e+00> : vector<10xf32>
    %98 = vector.multi_reduction <add>, %97, %cst_59 [1] : vector<10x10xf32> to vector<10xf32>
    %99 = vector.shape_cast %98 : vector<10xf32> to vector<10x1xf32>
    %100 = tpu.reciprocal %99 {approx = true} : vector<10x1xf32> -> vector<10x1xf32>
    %101 = vector.broadcast %100 : vector<10x1xf32> to vector<10x10xf32>
    %102 = arith.mulf %97, %101 : vector<10x10xf32>
    %cst_60 = arith.constant dense<0.000000e+00> : vector<10x8xf32>
    %103 = tpu.matmul %102, %90, %cst_60 {dimension_numbers = #tpu.dot_dimension_numbers<[1], [0], [0], [1], [0, 0, 1, 1], [], []>} : vector<10x10xf32>, vector<10x8xf32>, vector<10x8xf32> -> vector<10x8xf32>
    %c0_61 = arith.constant 0 : index
    %c8 = arith.constant 8 : index
    %104 = vector.load %arg28[%c0_61, %c8] : memref<10x32xf32, #tpu.memory_space<vmem>>, vector<10x8xf32>
    tpu.vector_store %arg28[%c0_61, %c8], %103 {strides = array<i32>} : memref<10x32xf32, #tpu.memory_space<vmem>>, vector<10x8xf32>,
    %105 = vector.extract_strided_slice %56 {offsets = [0, 16], sizes = [10, 8], strides = [1, 1]} : vector<10x32xf32> to vector<10x8xf32>
    %106 = vector.extract_strided_slice %63 {offsets = [0, 16], sizes = [10, 8], strides = [1, 1]} : vector<10x32xf32> to vector<10x8xf32>
    %107 = vector.extract_strided_slice %70 {offsets = [0, 16], sizes = [10, 8], strides = [1, 1]} : vector<10x32xf32> to vector<10x8xf32>
    %cst_62 = arith.constant dense<0.000000e+00> : vector<10x10xf32>
    %108 = tpu.matmul %105, %106, %cst_62 {dimension_numbers = #tpu.dot_dimension_numbers<[1], [1], [0], [0], [0, 0, 1, 0], [], []>} : vector<10x8xf32>, vector<10x8xf32>, vector<10x10xf32> -> vector<10x10xf32>
    %109 = arith.addf %108, %21 : vector<10x10xf32>
    %cst_63 = arith.constant dense<0xFF800000> : vector<10xf32>
    %110 = vector.multi_reduction <maximumf>, %109, %cst_63 [1] : vector<10x10xf32> to vector<10xf32>
    %111 = vector.shape_cast %110 : vector<10xf32> to vector<10x1xf32>
    %112 = vector.broadcast %111 : vector<10x1xf32> to vector<10x10xf32>
    %113 = arith.subf %109, %112 : vector<10x10xf32>
    %114 = math.exp %113 : vector<10x10xf32>
    %cst_64 = arith.constant dense<0.000000e+00> : vector<10xf32>
    %115 = vector.multi_reduction <add>, %114, %cst_64 [1] : vector<10x10xf32> to vector<10xf32>
    %116 = vector.shape_cast %115 : vector<10xf32> to vector<10x1xf32>
    %117 = tpu.reciprocal %116 {approx = true} : vector<10x1xf32> -> vector<10x1xf32>
    %118 = vector.broadcast %117 : vector<10x1xf32> to vector<10x10xf32>
    %119 = arith.mulf %114, %118 : vector<10x10xf32>
    %cst_65 = arith.constant dense<0.000000e+00> : vector<10x8xf32>
    %120 = tpu.matmul %119, %107, %cst_65 {dimension_numbers = #tpu.dot_dimension_numbers<[1], [0], [0], [1], [0, 0, 1, 1], [], []>} : vector<10x10xf32>, vector<10x8xf32>, vector<10x8xf32> -> vector<10x8xf32>
    %c0_66 = arith.constant 0 : index
    %c16 = arith.constant 16 : index
    %121 = vector.load %arg28[%c0_66, %c16] : memref<10x32xf32, #tpu.memory_space<vmem>>, vector<10x8xf32>
    tpu.vector_store %arg28[%c0_66, %c16], %120 {strides = array<i32>} : memref<10x32xf32, #tpu.memory_space<vmem>>, vector<10x8xf32>,
    %122 = vector.extract_strided_slice %56 {offsets = [0, 24], sizes = [10, 8], strides = [1, 1]} : vector<10x32xf32> to vector<10x8xf32>
    %123 = vector.extract_strided_slice %63 {offsets = [0, 24], sizes = [10, 8], strides = [1, 1]} : vector<10x32xf32> to vector<10x8xf32>
    %124 = vector.extract_strided_slice %70 {offsets = [0, 24], sizes = [10, 8], strides = [1, 1]} : vector<10x32xf32> to vector<10x8xf32>
    %cst_67 = arith.constant dense<0.000000e+00> : vector<10x10xf32>
    %125 = tpu.matmul %122, %123, %cst_67 {dimension_numbers = #tpu.dot_dimension_numbers<[1], [1], [0], [0], [0, 0, 1, 0], [], []>} : vector<10x8xf32>, vector<10x8xf32>, vector<10x10xf32> -> vector<10x10xf32>
    %126 = arith.addf %125, %21 : vector<10x10xf32>
    %cst_68 = arith.constant dense<0xFF800000> : vector<10xf32>
    %127 = vector.multi_reduction <maximumf>, %126, %cst_68 [1] : vector<10x10xf32> to vector<10xf32>
    %128 = vector.shape_cast %127 : vector<10xf32> to vector<10x1xf32>
    %129 = vector.broadcast %128 : vector<10x1xf32> to vector<10x10xf32>
    %130 = arith.subf %126, %129 : vector<10x10xf32>
    %131 = math.exp %130 : vector<10x10xf32>
    %cst_69 = arith.constant dense<0.000000e+00> : vector<10xf32>
    %132 = vector.multi_reduction <add>, %131, %cst_69 [1] : vector<10x10xf32> to vector<10xf32>
    %133 = vector.shape_cast %132 : vector<10xf32> to vector<10x1xf32>
    %134 = tpu.reciprocal %133 {approx = true} : vector<10x1xf32> -> vector<10x1xf32>
    %135 = vector.broadcast %134 : vector<10x1xf32> to vector<10x10xf32>
    %136 = arith.mulf %131, %135 : vector<10x10xf32>
    %cst_70 = arith.constant dense<0.000000e+00> : vector<10x8xf32>
    %137 = tpu.matmul %136, %124, %cst_70 {dimension_numbers = #tpu.dot_dimension_numbers<[1], [0], [0], [1], [0, 0, 1, 1], [], []>} : vector<10x10xf32>, vector<10x8xf32>, vector<10x8xf32> -> vector<10x8xf32>
    %c0_71 = arith.constant 0 : index
    %c24 = arith.constant 24 : index
    %138 = vector.load %arg28[%c0_71, %c24] : memref<10x32xf32, #tpu.memory_space<vmem>>, vector<10x8xf32>
    tpu.vector_store %arg28[%c0_71, %c24], %137 {strides = array<i32>} : memref<10x32xf32, #tpu.memory_space<vmem>>, vector<10x8xf32>,
    %c0_72 = arith.constant 0 : index
    %c0_73 = arith.constant 0 : index
    %139 = vector.load %arg28[%c0_72, %c0_73] : memref<10x32xf32, #tpu.memory_space<vmem>>, vector<10x32xf32>
    %c0_74 = arith.constant 0 : index
    %c0_75 = arith.constant 0 : index
    %c0_76 = arith.constant 0 : index
    %140 = vector.load %arg14[%c0_74, %c0_75, %c0_76] : memref<2x32x32xf32, #tpu.memory_space<vmem>>, vector<1x32x32xf32>
    %141 = vector.shape_cast %140 : vector<1x32x32xf32> to vector<32x32xf32>
    %cst_77 = arith.constant dense<0.000000e+00> : vector<10x32xf32>
    %142 = tpu.matmul %139, %141, %cst_77 {dimension_numbers = #tpu.dot_dimension_numbers<[1], [0], [0], [1], [0, 0, 1, 1], [], []>} : vector<10x32xf32>, vector<32x32xf32>, vector<10x32xf32> -> vector<10x32xf32>
    %143 = arith.addf %20, %142 : vector<10x32xf32>
    %c0_78 = arith.constant 0 : index
    %c0_79 = arith.constant 0 : index
    %c0_80 = arith.constant 0 : index
    %144 = vector.load %arg15[%c0_78, %c0_79, %c0_80] : memref<2x1x32xf32, #tpu.memory_space<vmem>>, vector<1x1x32xf32>
    %145 = vector.shape_cast %144 : vector<1x1x32xf32> to vector<1x32xf32>
    %146 = vector.broadcast %145 : vector<1x32xf32> to vector<10x32xf32>
    %147 = arith.addf %143, %146 : vector<10x32xf32>
    %c0_81 = arith.constant 0 : index
    %c0_82 = arith.constant 0 : index
    %c0_83 = arith.constant 0 : index
    %148 = vector.load %arg16[%c0_81, %c0_82, %c0_83] : memref<2x1x32xf32, #tpu.memory_space<vmem>>, vector<1x1x32xf32>
    %149 = vector.shape_cast %148 : vector<1x1x32xf32> to vector<1x32xf32>
    %c0_84 = arith.constant 0 : index
    %c0_85 = arith.constant 0 : index
    %c0_86 = arith.constant 0 : index
    %150 = vector.load %arg17[%c0_84, %c0_85, %c0_86] : memref<2x1x32xf32, #tpu.memory_space<vmem>>, vector<1x1x32xf32>
    %151 = vector.shape_cast %150 : vector<1x1x32xf32> to vector<1x32xf32>
    %cst_87 = arith.constant dense<0.000000e+00> : vector<10xf32>
    %152 = vector.multi_reduction <add>, %147, %cst_87 [1] : vector<10x32xf32> to vector<10xf32>
    %153 = vector.shape_cast %152 : vector<10xf32> to vector<10x1xf32>
    %cst_88 = arith.constant 3.200000e+01 : f32
    %154 = vector.broadcast %cst_88 : f32 to vector<10x1xf32>
    %155 = arith.divf %153, %154 : vector<10x1xf32>
    %156 = vector.broadcast %155 : vector<10x1xf32> to vector<10x32xf32>
    %157 = arith.subf %147, %156 : vector<10x32xf32>
    %158 = arith.mulf %157, %157 : vector<10x32xf32>
    %cst_89 = arith.constant dense<0.000000e+00> : vector<10xf32>
    %159 = vector.multi_reduction <add>, %158, %cst_89 [1] : vector<10x32xf32> to vector<10xf32>
    %160 = vector.shape_cast %159 : vector<10xf32> to vector<10x1xf32>
    %cst_90 = arith.constant 3.200000e+01 : f32
    %161 = vector.broadcast %cst_90 : f32 to vector<10x1xf32>
    %162 = arith.divf %160, %161 : vector<10x1xf32>
    %163 = vector.broadcast %155 : vector<10x1xf32> to vector<10x32xf32>
    %164 = arith.subf %147, %163 : vector<10x32xf32>
    %cst_91 = arith.constant 9.99999996E-13 : f32
    %165 = vector.broadcast %cst_91 : f32 to vector<10x1xf32>
    %166 = arith.addf %162, %165 : vector<10x1xf32>
    %167 = math.rsqrt %166 : vector<10x1xf32>
    %168 = vector.broadcast %167 : vector<10x1xf32> to vector<10x32xf32>
    %169 = arith.mulf %164, %168 : vector<10x32xf32>
    %170 = vector.broadcast %149 : vector<1x32xf32> to vector<10x32xf32>
    %171 = arith.mulf %169, %170 : vector<10x32xf32>
    %172 = vector.broadcast %151 : vector<1x32xf32> to vector<10x32xf32>
    %173 = arith.addf %171, %172 : vector<10x32xf32>
    %c0_92 = arith.constant 0 : index
    %c0_93 = arith.constant 0 : index
    %c0_94 = arith.constant 0 : index
    %174 = vector.load %arg18[%c0_92, %c0_93, %c0_94] : memref<2x32x64xf32, #tpu.memory_space<vmem>>, vector<1x32x64xf32>
    %175 = vector.shape_cast %174 : vector<1x32x64xf32> to vector<32x64xf32>
    %cst_95 = arith.constant dense<0.000000e+00> : vector<10x64xf32>
    %176 = tpu.matmul %173, %175, %cst_95 {dimension_numbers = #tpu.dot_dimension_numbers<[1], [0], [0], [1], [0, 0, 1, 1], [], []>} : vector<10x32xf32>, vector<32x64xf32>, vector<10x64xf32> -> vector<10x64xf32>
    %c0_96 = arith.constant 0 : index
    %c0_97 = arith.constant 0 : index
    %c0_98 = arith.constant 0 : index
    %177 = vector.load %arg19[%c0_96, %c0_97, %c0_98] : memref<2x1x64xf32, #tpu.memory_space<vmem>>, vector<1x1x64xf32>
    %178 = vector.shape_cast %177 : vector<1x1x64xf32> to vector<1x64xf32>
    %179 = vector.broadcast %178 : vector<1x64xf32> to vector<10x64xf32>
    %180 = arith.addf %176, %179 : vector<10x64xf32>
    %cst_99 = arith.constant 5.000000e-01 : f32
    %181 = vector.broadcast %cst_99 : f32 to vector<10x64xf32>
    %182 = arith.mulf %181, %180 : vector<10x64xf32>
    %cst_100 = arith.constant 4.471500e-02 : f32
    %183 = vector.broadcast %cst_100 : f32 to vector<10x64xf32>
    %184 = arith.mulf %183, %180 : vector<10x64xf32>
    %185 = arith.mulf %184, %180 : vector<10x64xf32>
    %186 = arith.mulf %185, %180 : vector<10x64xf32>
    %187 = arith.addf %180, %186 : vector<10x64xf32>
    %cst_101 = arith.constant 0.797884583 : f32
    %188 = vector.broadcast %cst_101 : f32 to vector<10x64xf32>
    %189 = arith.mulf %188, %187 : vector<10x64xf32>
    %190 = math.tanh %189 : vector<10x64xf32>
    %cst_102 = arith.constant 1.000000e+00 : f32
    %191 = vector.broadcast %cst_102 : f32 to vector<10x64xf32>
    %192 = arith.addf %191, %190 : vector<10x64xf32>
    %193 = arith.mulf %182, %192 : vector<10x64xf32>
    %c0_103 = arith.constant 0 : index
    %c0_104 = arith.constant 0 : index
    %c0_105 = arith.constant 0 : index
    %194 = vector.load %arg20[%c0_103, %c0_104, %c0_105] : memref<2x64x32xf32, #tpu.memory_space<vmem>>, vector<1x64x32xf32>
    %195 = vector.shape_cast %194 : vector<1x64x32xf32> to vector<64x32xf32>
    %cst_106 = arith.constant dense<0.000000e+00> : vector<10x32xf32>
    %196 = tpu.matmul %193, %195, %cst_106 {dimension_numbers = #tpu.dot_dimension_numbers<[1], [0], [0], [1], [0, 0, 1, 1], [], []>} : vector<10x64xf32>, vector<64x32xf32>, vector<10x32xf32> -> vector<10x32xf32>
    %197 = arith.addf %147, %196 : vector<10x32xf32>
    %c0_107 = arith.constant 0 : index
    %c0_108 = arith.constant 0 : index
    %c0_109 = arith.constant 0 : index
    %198 = vector.load %arg21[%c0_107, %c0_108, %c0_109] : memref<2x1x32xf32, #tpu.memory_space<vmem>>, vector<1x1x32xf32>
    %199 = vector.shape_cast %198 : vector<1x1x32xf32> to vector<1x32xf32>
    %200 = vector.broadcast %199 : vector<1x32xf32> to vector<10x32xf32>
    %201 = arith.addf %197, %200 : vector<10x32xf32>
    %c1_110 = arith.constant 1 : index
    %c0_111 = arith.constant 0 : index
    %c0_112 = arith.constant 0 : index
    %202 = vector.load %arg6[%c1_110, %c0_111, %c0_112] : memref<2x1x32xf32, #tpu.memory_space<vmem>>, vector<1x1x32xf32>
    %203 = vector.shape_cast %202 : vector<1x1x32xf32> to vector<1x32xf32>
    %c1_113 = arith.constant 1 : index
    %c0_114 = arith.constant 0 : index
    %c0_115 = arith.constant 0 : index
    %204 = vector.load %arg7[%c1_113, %c0_114, %c0_115] : memref<2x1x32xf32, #tpu.memory_space<vmem>>, vector<1x1x32xf32>
    %205 = vector.shape_cast %204 : vector<1x1x32xf32> to vector<1x32xf32>
    %cst_116 = arith.constant dense<0.000000e+00> : vector<10xf32>
    %206 = vector.multi_reduction <add>, %201, %cst_116 [1] : vector<10x32xf32> to vector<10xf32>
    %207 = vector.shape_cast %206 : vector<10xf32> to vector<10x1xf32>
    %cst_117 = arith.constant 3.200000e+01 : f32
    %208 = vector.broadcast %cst_117 : f32 to vector<10x1xf32>
    %209 = arith.divf %207, %208 : vector<10x1xf32>
    %210 = vector.broadcast %209 : vector<10x1xf32> to vector<10x32xf32>
    %211 = arith.subf %201, %210 : vector<10x32xf32>
    %212 = arith.mulf %211, %211 : vector<10x32xf32>
    %cst_118 = arith.constant dense<0.000000e+00> : vector<10xf32>
    %213 = vector.multi_reduction <add>, %212, %cst_118 [1] : vector<10x32xf32> to vector<10xf32>
    %214 = vector.shape_cast %213 : vector<10xf32> to vector<10x1xf32>
    %cst_119 = arith.constant 3.200000e+01 : f32
    %215 = vector.broadcast %cst_119 : f32 to vector<10x1xf32>
    %216 = arith.divf %214, %215 : vector<10x1xf32>
    %217 = vector.broadcast %209 : vector<10x1xf32> to vector<10x32xf32>
    %218 = arith.subf %201, %217 : vector<10x32xf32>
    %cst_120 = arith.constant 9.99999996E-13 : f32
    %219 = vector.broadcast %cst_120 : f32 to vector<10x1xf32>
    %220 = arith.addf %216, %219 : vector<10x1xf32>
    %221 = math.rsqrt %220 : vector<10x1xf32>
    %222 = vector.broadcast %221 : vector<10x1xf32> to vector<10x32xf32>
    %223 = arith.mulf %218, %222 : vector<10x32xf32>
    %224 = vector.broadcast %203 : vector<1x32xf32> to vector<10x32xf32>
    %225 = arith.mulf %223, %224 : vector<10x32xf32>
    %226 = vector.broadcast %205 : vector<1x32xf32> to vector<10x32xf32>
    %227 = arith.addf %225, %226 : vector<10x32xf32>
    %c1_121 = arith.constant 1 : index
    %c0_122 = arith.constant 0 : index
    %c0_123 = arith.constant 0 : index
    %228 = vector.load %arg8[%c1_121, %c0_122, %c0_123] : memref<2x32x32xf32, #tpu.memory_space<vmem>>, vector<1x32x32xf32>
    %229 = vector.shape_cast %228 : vector<1x32x32xf32> to vector<32x32xf32>
    %cst_124 = arith.constant dense<0.000000e+00> : vector<10x32xf32>
    %230 = tpu.matmul %227, %229, %cst_124 {dimension_numbers = #tpu.dot_dimension_numbers<[1], [0], [0], [1], [0, 0, 1, 1], [], []>} : vector<10x32xf32>, vector<32x32xf32>, vector<10x32xf32> -> vector<10x32xf32>
    %c1_125 = arith.constant 1 : index
    %c0_126 = arith.constant 0 : index
    %c0_127 = arith.constant 0 : index
    %231 = vector.load %arg9[%c1_125, %c0_126, %c0_127] : memref<2x1x32xf32, #tpu.memory_space<vmem>>, vector<1x1x32xf32>
    %232 = vector.shape_cast %231 : vector<1x1x32xf32> to vector<1x32xf32>
    %233 = vector.broadcast %232 : vector<1x32xf32> to vector<10x32xf32>
    %234 = arith.addf %230, %233 : vector<10x32xf32>
    %cst_128 = arith.constant 0.353553385 : f32
    %235 = vector.broadcast %cst_128 : f32 to vector<10x32xf32>
    %236 = arith.mulf %234, %235 : vector<10x32xf32>
    %c1_129 = arith.constant 1 : index
    %c0_130 = arith.constant 0 : index
    %c0_131 = arith.constant 0 : index
    %237 = vector.load %arg10[%c1_129, %c0_130, %c0_131] : memref<2x32x32xf32, #tpu.memory_space<vmem>>, vector<1x32x32xf32>
    %238 = vector.shape_cast %237 : vector<1x32x32xf32> to vector<32x32xf32>
    %cst_132 = arith.constant dense<0.000000e+00> : vector<10x32xf32>
    %239 = tpu.matmul %227, %238, %cst_132 {dimension_numbers = #tpu.dot_dimension_numbers<[1], [0], [0], [1], [0, 0, 1, 1], [], []>} : vector<10x32xf32>, vector<32x32xf32>, vector<10x32xf32> -> vector<10x32xf32>
    %c1_133 = arith.constant 1 : index
    %c0_134 = arith.constant 0 : index
    %c0_135 = arith.constant 0 : index
    %240 = vector.load %arg11[%c1_133, %c0_134, %c0_135] : memref<2x1x32xf32, #tpu.memory_space<vmem>>, vector<1x1x32xf32>
    %241 = vector.shape_cast %240 : vector<1x1x32xf32> to vector<1x32xf32>
    %242 = vector.broadcast %241 : vector<1x32xf32> to vector<10x32xf32>
    %243 = arith.addf %239, %242 : vector<10x32xf32>
    %c1_136 = arith.constant 1 : index
    %c0_137 = arith.constant 0 : index
    %c0_138 = arith.constant 0 : index
    %244 = vector.load %arg12[%c1_136, %c0_137, %c0_138] : memref<2x32x32xf32, #tpu.memory_space<vmem>>, vector<1x32x32xf32>
    %245 = vector.shape_cast %244 : vector<1x32x32xf32> to vector<32x32xf32>
    %cst_139 = arith.constant dense<0.000000e+00> : vector<10x32xf32>
    %246 = tpu.matmul %227, %245, %cst_139 {dimension_numbers = #tpu.dot_dimension_numbers<[1], [0], [0], [1], [0, 0, 1, 1], [], []>} : vector<10x32xf32>, vector<32x32xf32>, vector<10x32xf32> -> vector<10x32xf32>
    %c1_140 = arith.constant 1 : index
    %c0_141 = arith.constant 0 : index
    %c0_142 = arith.constant 0 : index
    %247 = vector.load %arg13[%c1_140, %c0_141, %c0_142] : memref<2x1x32xf32, #tpu.memory_space<vmem>>, vector<1x1x32xf32>
    %248 = vector.shape_cast %247 : vector<1x1x32xf32> to vector<1x32xf32>
    %249 = vector.broadcast %248 : vector<1x32xf32> to vector<10x32xf32>
    %250 = arith.addf %246, %249 : vector<10x32xf32>
    %251 = vector.extract_strided_slice %236 {offsets = [0, 0], sizes = [10, 8], strides = [1, 1]} : vector<10x32xf32> to vector<10x8xf32>
    %252 = vector.extract_strided_slice %243 {offsets = [0, 0], sizes = [10, 8], strides = [1, 1]} : vector<10x32xf32> to vector<10x8xf32>
    %253 = vector.extract_strided_slice %250 {offsets = [0, 0], sizes = [10, 8], strides = [1, 1]} : vector<10x32xf32> to vector<10x8xf32>
    %cst_143 = arith.constant dense<0.000000e+00> : vector<10x10xf32>
    %254 = tpu.matmul %251, %252, %cst_143 {dimension_numbers = #tpu.dot_dimension_numbers<[1], [1], [0], [0], [0, 0, 1, 0], [], []>} : vector<10x8xf32>, vector<10x8xf32>, vector<10x10xf32> -> vector<10x10xf32>
    %255 = arith.addf %254, %21 : vector<10x10xf32>
    %cst_144 = arith.constant dense<0xFF800000> : vector<10xf32>
    %256 = vector.multi_reduction <maximumf>, %255, %cst_144 [1] : vector<10x10xf32> to vector<10xf32>
    %257 = vector.shape_cast %256 : vector<10xf32> to vector<10x1xf32>
    %258 = vector.broadcast %257 : vector<10x1xf32> to vector<10x10xf32>
    %259 = arith.subf %255, %258 : vector<10x10xf32>
    %260 = math.exp %259 : vector<10x10xf32>
    %cst_145 = arith.constant dense<0.000000e+00> : vector<10xf32>
    %261 = vector.multi_reduction <add>, %260, %cst_145 [1] : vector<10x10xf32> to vector<10xf32>
    %262 = vector.shape_cast %261 : vector<10xf32> to vector<10x1xf32>
    %263 = tpu.reciprocal %262 {approx = true} : vector<10x1xf32> -> vector<10x1xf32>
    %264 = vector.broadcast %263 : vector<10x1xf32> to vector<10x10xf32>
    %265 = arith.mulf %260, %264 : vector<10x10xf32>
    %cst_146 = arith.constant dense<0.000000e+00> : vector<10x8xf32>
    %266 = tpu.matmul %265, %253, %cst_146 {dimension_numbers = #tpu.dot_dimension_numbers<[1], [0], [0], [1], [0, 0, 1, 1], [], []>} : vector<10x10xf32>, vector<10x8xf32>, vector<10x8xf32> -> vector<10x8xf32>
    %c0_147 = arith.constant 0 : index
    %c0_148 = arith.constant 0 : index
    %267 = vector.load %arg28[%c0_147, %c0_148] : memref<10x32xf32, #tpu.memory_space<vmem>>, vector<10x8xf32>
    tpu.vector_store %arg28[%c0_147, %c0_148], %266 {strides = array<i32>} : memref<10x32xf32, #tpu.memory_space<vmem>>, vector<10x8xf32>,
    %268 = vector.extract_strided_slice %236 {offsets = [0, 8], sizes = [10, 8], strides = [1, 1]} : vector<10x32xf32> to vector<10x8xf32>
    %269 = vector.extract_strided_slice %243 {offsets = [0, 8], sizes = [10, 8], strides = [1, 1]} : vector<10x32xf32> to vector<10x8xf32>
    %270 = vector.extract_strided_slice %250 {offsets = [0, 8], sizes = [10, 8], strides = [1, 1]} : vector<10x32xf32> to vector<10x8xf32>
    %cst_149 = arith.constant dense<0.000000e+00> : vector<10x10xf32>
    %271 = tpu.matmul %268, %269, %cst_149 {dimension_numbers = #tpu.dot_dimension_numbers<[1], [1], [0], [0], [0, 0, 1, 0], [], []>} : vector<10x8xf32>, vector<10x8xf32>, vector<10x10xf32> -> vector<10x10xf32>
    %272 = arith.addf %271, %21 : vector<10x10xf32>
    %cst_150 = arith.constant dense<0xFF800000> : vector<10xf32>
    %273 = vector.multi_reduction <maximumf>, %272, %cst_150 [1] : vector<10x10xf32> to vector<10xf32>
    %274 = vector.shape_cast %273 : vector<10xf32> to vector<10x1xf32>
    %275 = vector.broadcast %274 : vector<10x1xf32> to vector<10x10xf32>
    %276 = arith.subf %272, %275 : vector<10x10xf32>
    %277 = math.exp %276 : vector<10x10xf32>
    %cst_151 = arith.constant dense<0.000000e+00> : vector<10xf32>
    %278 = vector.multi_reduction <add>, %277, %cst_151 [1] : vector<10x10xf32> to vector<10xf32>
    %279 = vector.shape_cast %278 : vector<10xf32> to vector<10x1xf32>
    %280 = tpu.reciprocal %279 {approx = true} : vector<10x1xf32> -> vector<10x1xf32>
    %281 = vector.broadcast %280 : vector<10x1xf32> to vector<10x10xf32>
    %282 = arith.mulf %277, %281 : vector<10x10xf32>
    %cst_152 = arith.constant dense<0.000000e+00> : vector<10x8xf32>
    %283 = tpu.matmul %282, %270, %cst_152 {dimension_numbers = #tpu.dot_dimension_numbers<[1], [0], [0], [1], [0, 0, 1, 1], [], []>} : vector<10x10xf32>, vector<10x8xf32>, vector<10x8xf32> -> vector<10x8xf32>
    %c0_153 = arith.constant 0 : index
    %c8_154 = arith.constant 8 : index
    %284 = vector.load %arg28[%c0_153, %c8_154] : memref<10x32xf32, #tpu.memory_space<vmem>>, vector<10x8xf32>
    tpu.vector_store %arg28[%c0_153, %c8_154], %283 {strides = array<i32>} : memref<10x32xf32, #tpu.memory_space<vmem>>, vector<10x8xf32>,
    %285 = vector.extract_strided_slice %236 {offsets = [0, 16], sizes = [10, 8], strides = [1, 1]} : vector<10x32xf32> to vector<10x8xf32>
    %286 = vector.extract_strided_slice %243 {offsets = [0, 16], sizes = [10, 8], strides = [1, 1]} : vector<10x32xf32> to vector<10x8xf32>
    %287 = vector.extract_strided_slice %250 {offsets = [0, 16], sizes = [10, 8], strides = [1, 1]} : vector<10x32xf32> to vector<10x8xf32>
    %cst_155 = arith.constant dense<0.000000e+00> : vector<10x10xf32>
    %288 = tpu.matmul %285, %286, %cst_155 {dimension_numbers = #tpu.dot_dimension_numbers<[1], [1], [0], [0], [0, 0, 1, 0], [], []>} : vector<10x8xf32>, vector<10x8xf32>, vector<10x10xf32> -> vector<10x10xf32>
    %289 = arith.addf %288, %21 : vector<10x10xf32>
    %cst_156 = arith.constant dense<0xFF800000> : vector<10xf32>
    %290 = vector.multi_reduction <maximumf>, %289, %cst_156 [1] : vector<10x10xf32> to vector<10xf32>
    %291 = vector.shape_cast %290 : vector<10xf32> to vector<10x1xf32>
    %292 = vector.broadcast %291 : vector<10x1xf32> to vector<10x10xf32>
    %293 = arith.subf %289, %292 : vector<10x10xf32>
    %294 = math.exp %293 : vector<10x10xf32>
    %cst_157 = arith.constant dense<0.000000e+00> : vector<10xf32>
    %295 = vector.multi_reduction <add>, %294, %cst_157 [1] : vector<10x10xf32> to vector<10xf32>
    %296 = vector.shape_cast %295 : vector<10xf32> to vector<10x1xf32>
    %297 = tpu.reciprocal %296 {approx = true} : vector<10x1xf32> -> vector<10x1xf32>
    %298 = vector.broadcast %297 : vector<10x1xf32> to vector<10x10xf32>
    %299 = arith.mulf %294, %298 : vector<10x10xf32>
    %cst_158 = arith.constant dense<0.000000e+00> : vector<10x8xf32>
    %300 = tpu.matmul %299, %287, %cst_158 {dimension_numbers = #tpu.dot_dimension_numbers<[1], [0], [0], [1], [0, 0, 1, 1], [], []>} : vector<10x10xf32>, vector<10x8xf32>, vector<10x8xf32> -> vector<10x8xf32>
    %c0_159 = arith.constant 0 : index
    %c16_160 = arith.constant 16 : index
    %301 = vector.load %arg28[%c0_159, %c16_160] : memref<10x32xf32, #tpu.memory_space<vmem>>, vector<10x8xf32>
    tpu.vector_store %arg28[%c0_159, %c16_160], %300 {strides = array<i32>} : memref<10x32xf32, #tpu.memory_space<vmem>>, vector<10x8xf32>,
    %302 = vector.extract_strided_slice %236 {offsets = [0, 24], sizes = [10, 8], strides = [1, 1]} : vector<10x32xf32> to vector<10x8xf32>
    %303 = vector.extract_strided_slice %243 {offsets = [0, 24], sizes = [10, 8], strides = [1, 1]} : vector<10x32xf32> to vector<10x8xf32>
    %304 = vector.extract_strided_slice %250 {offsets = [0, 24], sizes = [10, 8], strides = [1, 1]} : vector<10x32xf32> to vector<10x8xf32>
    %cst_161 = arith.constant dense<0.000000e+00> : vector<10x10xf32>
    %305 = tpu.matmul %302, %303, %cst_161 {dimension_numbers = #tpu.dot_dimension_numbers<[1], [1], [0], [0], [0, 0, 1, 0], [], []>} : vector<10x8xf32>, vector<10x8xf32>, vector<10x10xf32> -> vector<10x10xf32>
    %306 = arith.addf %305, %21 : vector<10x10xf32>
    %cst_162 = arith.constant dense<0xFF800000> : vector<10xf32>
    %307 = vector.multi_reduction <maximumf>, %306, %cst_162 [1] : vector<10x10xf32> to vector<10xf32>
    %308 = vector.shape_cast %307 : vector<10xf32> to vector<10x1xf32>
    %309 = vector.broadcast %308 : vector<10x1xf32> to vector<10x10xf32>
    %310 = arith.subf %306, %309 : vector<10x10xf32>
    %311 = math.exp %310 : vector<10x10xf32>
    %cst_163 = arith.constant dense<0.000000e+00> : vector<10xf32>
    %312 = vector.multi_reduction <add>, %311, %cst_163 [1] : vector<10x10xf32> to vector<10xf32>
    %313 = vector.shape_cast %312 : vector<10xf32> to vector<10x1xf32>
    %314 = tpu.reciprocal %313 {approx = true} : vector<10x1xf32> -> vector<10x1xf32>
    %315 = vector.broadcast %314 : vector<10x1xf32> to vector<10x10xf32>
    %316 = arith.mulf %311, %315 : vector<10x10xf32>
    %cst_164 = arith.constant dense<0.000000e+00> : vector<10x8xf32>
    %317 = tpu.matmul %316, %304, %cst_164 {dimension_numbers = #tpu.dot_dimension_numbers<[1], [0], [0], [1], [0, 0, 1, 1], [], []>} : vector<10x10xf32>, vector<10x8xf32>, vector<10x8xf32> -> vector<10x8xf32>
    %c0_165 = arith.constant 0 : index
    %c24_166 = arith.constant 24 : index
    %318 = vector.load %arg28[%c0_165, %c24_166] : memref<10x32xf32, #tpu.memory_space<vmem>>, vector<10x8xf32>
    tpu.vector_store %arg28[%c0_165, %c24_166], %317 {strides = array<i32>} : memref<10x32xf32, #tpu.memory_space<vmem>>, vector<10x8xf32>,
    %c0_167 = arith.constant 0 : index
    %c0_168 = arith.constant 0 : index
    %319 = vector.load %arg28[%c0_167, %c0_168] : memref<10x32xf32, #tpu.memory_space<vmem>>, vector<10x32xf32>
    %c1_169 = arith.constant 1 : index
    %c0_170 = arith.constant 0 : index
    %c0_171 = arith.constant 0 : index
    %320 = vector.load %arg14[%c1_169, %c0_170, %c0_171] : memref<2x32x32xf32, #tpu.memory_space<vmem>>, vector<1x32x32xf32>
    %321 = vector.shape_cast %320 : vector<1x32x32xf32> to vector<32x32xf32>
    %cst_172 = arith.constant dense<0.000000e+00> : vector<10x32xf32>
    %322 = tpu.matmul %319, %321, %cst_172 {dimension_numbers = #tpu.dot_dimension_numbers<[1], [0], [0], [1], [0, 0, 1, 1], [], []>} : vector<10x32xf32>, vector<32x32xf32>, vector<10x32xf32> -> vector<10x32xf32>
    %323 = arith.addf %201, %322 : vector<10x32xf32>
    %c1_173 = arith.constant 1 : index
    %c0_174 = arith.constant 0 : index
    %c0_175 = arith.constant 0 : index
    %324 = vector.load %arg15[%c1_173, %c0_174, %c0_175] : memref<2x1x32xf32, #tpu.memory_space<vmem>>, vector<1x1x32xf32>
    %325 = vector.shape_cast %324 : vector<1x1x32xf32> to vector<1x32xf32>
    %326 = vector.broadcast %325 : vector<1x32xf32> to vector<10x32xf32>
    %327 = arith.addf %323, %326 : vector<10x32xf32>
    %c1_176 = arith.constant 1 : index
    %c0_177 = arith.constant 0 : index
    %c0_178 = arith.constant 0 : index
    %328 = vector.load %arg16[%c1_176, %c0_177, %c0_178] : memref<2x1x32xf32, #tpu.memory_space<vmem>>, vector<1x1x32xf32>
    %329 = vector.shape_cast %328 : vector<1x1x32xf32> to vector<1x32xf32>
    %c1_179 = arith.constant 1 : index
    %c0_180 = arith.constant 0 : index
    %c0_181 = arith.constant 0 : index
    %330 = vector.load %arg17[%c1_179, %c0_180, %c0_181] : memref<2x1x32xf32, #tpu.memory_space<vmem>>, vector<1x1x32xf32>
    %331 = vector.shape_cast %330 : vector<1x1x32xf32> to vector<1x32xf32>
    %cst_182 = arith.constant dense<0.000000e+00> : vector<10xf32>
    %332 = vector.multi_reduction <add>, %327, %cst_182 [1] : vector<10x32xf32> to vector<10xf32>
    %333 = vector.shape_cast %332 : vector<10xf32> to vector<10x1xf32>
    %cst_183 = arith.constant 3.200000e+01 : f32
    %334 = vector.broadcast %cst_183 : f32 to vector<10x1xf32>
    %335 = arith.divf %333, %334 : vector<10x1xf32>
    %336 = vector.broadcast %335 : vector<10x1xf32> to vector<10x32xf32>
    %337 = arith.subf %327, %336 : vector<10x32xf32>
    %338 = arith.mulf %337, %337 : vector<10x32xf32>
    %cst_184 = arith.constant dense<0.000000e+00> : vector<10xf32>
    %339 = vector.multi_reduction <add>, %338, %cst_184 [1] : vector<10x32xf32> to vector<10xf32>
    %340 = vector.shape_cast %339 : vector<10xf32> to vector<10x1xf32>
    %cst_185 = arith.constant 3.200000e+01 : f32
    %341 = vector.broadcast %cst_185 : f32 to vector<10x1xf32>
    %342 = arith.divf %340, %341 : vector<10x1xf32>
    %343 = vector.broadcast %335 : vector<10x1xf32> to vector<10x32xf32>
    %344 = arith.subf %327, %343 : vector<10x32xf32>
    %cst_186 = arith.constant 9.99999996E-13 : f32
    %345 = vector.broadcast %cst_186 : f32 to vector<10x1xf32>
    %346 = arith.addf %342, %345 : vector<10x1xf32>
    %347 = math.rsqrt %346 : vector<10x1xf32>
    %348 = vector.broadcast %347 : vector<10x1xf32> to vector<10x32xf32>
    %349 = arith.mulf %344, %348 : vector<10x32xf32>
    %350 = vector.broadcast %329 : vector<1x32xf32> to vector<10x32xf32>
    %351 = arith.mulf %349, %350 : vector<10x32xf32>
    %352 = vector.broadcast %331 : vector<1x32xf32> to vector<10x32xf32>
    %353 = arith.addf %351, %352 : vector<10x32xf32>
    %c1_187 = arith.constant 1 : index
    %c0_188 = arith.constant 0 : index
    %c0_189 = arith.constant 0 : index
    %354 = vector.load %arg18[%c1_187, %c0_188, %c0_189] : memref<2x32x64xf32, #tpu.memory_space<vmem>>, vector<1x32x64xf32>
    %355 = vector.shape_cast %354 : vector<1x32x64xf32> to vector<32x64xf32>
    %cst_190 = arith.constant dense<0.000000e+00> : vector<10x64xf32>
    %356 = tpu.matmul %353, %355, %cst_190 {dimension_numbers = #tpu.dot_dimension_numbers<[1], [0], [0], [1], [0, 0, 1, 1], [], []>} : vector<10x32xf32>, vector<32x64xf32>, vector<10x64xf32> -> vector<10x64xf32>
    %c1_191 = arith.constant 1 : index
    %c0_192 = arith.constant 0 : index
    %c0_193 = arith.constant 0 : index
    %357 = vector.load %arg19[%c1_191, %c0_192, %c0_193] : memref<2x1x64xf32, #tpu.memory_space<vmem>>, vector<1x1x64xf32>
    %358 = vector.shape_cast %357 : vector<1x1x64xf32> to vector<1x64xf32>
    %359 = vector.broadcast %358 : vector<1x64xf32> to vector<10x64xf32>
    %360 = arith.addf %356, %359 : vector<10x64xf32>
    %cst_194 = arith.constant 5.000000e-01 : f32
    %361 = vector.broadcast %cst_194 : f32 to vector<10x64xf32>
    %362 = arith.mulf %361, %360 : vector<10x64xf32>
    %cst_195 = arith.constant 4.471500e-02 : f32
    %363 = vector.broadcast %cst_195 : f32 to vector<10x64xf32>
    %364 = arith.mulf %363, %360 : vector<10x64xf32>
    %365 = arith.mulf %364, %360 : vector<10x64xf32>
    %366 = arith.mulf %365, %360 : vector<10x64xf32>
    %367 = arith.addf %360, %366 : vector<10x64xf32>
    %cst_196 = arith.constant 0.797884583 : f32
    %368 = vector.broadcast %cst_196 : f32 to vector<10x64xf32>
    %369 = arith.mulf %368, %367 : vector<10x64xf32>
    %370 = math.tanh %369 : vector<10x64xf32>
    %cst_197 = arith.constant 1.000000e+00 : f32
    %371 = vector.broadcast %cst_197 : f32 to vector<10x64xf32>
    %372 = arith.addf %371, %370 : vector<10x64xf32>
    %373 = arith.mulf %362, %372 : vector<10x64xf32>
    %c1_198 = arith.constant 1 : index
    %c0_199 = arith.constant 0 : index
    %c0_200 = arith.constant 0 : index
    %374 = vector.load %arg20[%c1_198, %c0_199, %c0_200] : memref<2x64x32xf32, #tpu.memory_space<vmem>>, vector<1x64x32xf32>
    %375 = vector.shape_cast %374 : vector<1x64x32xf32> to vector<64x32xf32>
    %cst_201 = arith.constant dense<0.000000e+00> : vector<10x32xf32>
    %376 = tpu.matmul %373, %375, %cst_201 {dimension_numbers = #tpu.dot_dimension_numbers<[1], [0], [0], [1], [0, 0, 1, 1], [], []>} : vector<10x64xf32>, vector<64x32xf32>, vector<10x32xf32> -> vector<10x32xf32>
    %377 = arith.addf %327, %376 : vector<10x32xf32>
    %c1_202 = arith.constant 1 : index
    %c0_203 = arith.constant 0 : index
    %c0_204 = arith.constant 0 : index
    %378 = vector.load %arg21[%c1_202, %c0_203, %c0_204] : memref<2x1x32xf32, #tpu.memory_space<vmem>>, vector<1x1x32xf32>
    %379 = vector.shape_cast %378 : vector<1x1x32xf32> to vector<1x32xf32>
    %380 = vector.broadcast %379 : vector<1x32xf32> to vector<10x32xf32>
    %381 = arith.addf %377, %380 : vector<10x32xf32>
    %c0_205 = arith.constant 0 : index
    %c0_206 = arith.constant 0 : index
    %382 = vector.load %arg22[%c0_205, %c0_206] : memref<1x32xf32, #tpu.memory_space<vmem>>, vector<1x32xf32>
    %c0_207 = arith.constant 0 : index
    %c0_208 = arith.constant 0 : index
    %383 = vector.load %arg23[%c0_207, %c0_208] : memref<1x32xf32, #tpu.memory_space<vmem>>, vector<1x32xf32>
    %cst_209 = arith.constant dense<0.000000e+00> : vector<10xf32>
    %384 = vector.multi_reduction <add>, %381, %cst_209 [1] : vector<10x32xf32> to vector<10xf32>
    %385 = vector.shape_cast %384 : vector<10xf32> to vector<10x1xf32>
    %cst_210 = arith.constant 3.200000e+01 : f32
    %386 = vector.broadcast %cst_210 : f32 to vector<10x1xf32>
    %387 = arith.divf %385, %386 : vector<10x1xf32>
    %388 = vector.broadcast %387 : vector<10x1xf32> to vector<10x32xf32>
    %389 = arith.subf %381, %388 : vector<10x32xf32>
    %390 = arith.mulf %389, %389 : vector<10x32xf32>
    %cst_211 = arith.constant dense<0.000000e+00> : vector<10xf32>
    %391 = vector.multi_reduction <add>, %390, %cst_211 [1] : vector<10x32xf32> to vector<10xf32>
    %392 = vector.shape_cast %391 : vector<10xf32> to vector<10x1xf32>
    %cst_212 = arith.constant 3.200000e+01 : f32
    %393 = vector.broadcast %cst_212 : f32 to vector<10x1xf32>
    %394 = arith.divf %392, %393 : vector<10x1xf32>
    %395 = vector.broadcast %387 : vector<10x1xf32> to vector<10x32xf32>
    %396 = arith.subf %381, %395 : vector<10x32xf32>
    %cst_213 = arith.constant 9.99999996E-13 : f32
    %397 = vector.broadcast %cst_213 : f32 to vector<10x1xf32>
    %398 = arith.addf %394, %397 : vector<10x1xf32>
    %399 = math.rsqrt %398 : vector<10x1xf32>
    %400 = vector.broadcast %399 : vector<10x1xf32> to vector<10x32xf32>
    %401 = arith.mulf %396, %400 : vector<10x32xf32>
    %402 = vector.broadcast %382 : vector<1x32xf32> to vector<10x32xf32>
    %403 = arith.mulf %401, %402 : vector<10x32xf32>
    %404 = vector.broadcast %383 : vector<1x32xf32> to vector<10x32xf32>
    %405 = arith.addf %403, %404 : vector<10x32xf32>
    %c0_214 = arith.constant 0 : index
    %c0_215 = arith.constant 0 : index
    %406 = vector.load %arg24[%c0_214, %c0_215] : memref<32x10xf32, #tpu.memory_space<vmem>>, vector<32x10xf32>
    %cst_216 = arith.constant dense<0.000000e+00> : vector<10x10xf32>
    %407 = tpu.matmul %405, %406, %cst_216 {dimension_numbers = #tpu.dot_dimension_numbers<[1], [0], [0], [1], [0, 0, 1, 1], [], []>} : vector<10x32xf32>, vector<32x10xf32>, vector<10x10xf32> -> vector<10x10xf32>
    %c0_217 = arith.constant 0 : index
    %c0_218 = arith.constant 0 : index
    %408 = vector.load %arg25[%c0_217, %c0_218] : memref<1x10xf32, #tpu.memory_space<vmem>>, vector<1x10xf32>
    %409 = vector.broadcast %408 : vector<1x10xf32> to vector<10x10xf32>
    %410 = arith.addf %407, %409 : vector<10x10xf32>
    %411 = vector.extract_strided_slice %410 {offsets = [0, 0], sizes = [1, 10], strides = [1, 1]} : vector<10x10xf32> to vector<1x10xf32>
    %c0_219 = arith.constant 0 : index
    %c0_220 = arith.constant 0 : index
    %412 = vector.load %arg26[%c0_219, %c0_220] : memref<2x10xf32, #tpu.memory_space<vmem>>, vector<1x10xf32>
    tpu.vector_store %arg26[%c0_219, %c0_220], %411 {strides = array<i32>} : memref<2x10xf32, #tpu.memory_space<vmem>>, vector<1x10xf32>,
    %413 = vector.extract_strided_slice %410 {offsets = [5, 0], sizes = [1, 10], strides = [1, 1]} : vector<10x10xf32> to vector<1x10xf32>
    %c1_221 = arith.constant 1 : index
    %c0_222 = arith.constant 0 : index
    %414 = vector.load %arg26[%c1_221, %c0_222] : memref<2x10xf32, #tpu.memory_space<vmem>>, vector<1x10xf32>
    tpu.vector_store %arg26[%c1_221, %c0_222], %413 {strides = array<i32>} : memref<2x10xf32, #tpu.memory_space<vmem>>, vector<1x10xf32>,
    return
  }
}

</mosaic_0001>

<bundles_post_ra>
// kernel: vit_forward.1
= control target key start
LH: loop header
LB: loop body
LE: loop exit
PB: predicated region body
PF: predicated region fallthrough
CT: control target
= control target key end

     0   :  { %s5229_s0 = inlined_call_operand.vmem [shape: f32[8,192], index: 0, kind: input, shape index: {}]   ;;  %s5230_s1 = inlined_call_operand.vmem [shape: f32[192,32], index: 1, kind: input, shape index: {}]   ;;  %s5231_s2 = inlined_call_operand.vmem [shape: f32[1,32], index: 2, kind: input, shape index: {}]   ;;  %s5232_s3 = inlined_call_operand.vmem [shape: f32[1,32], index: 3, kind: input, shape index: {}]   ;;  %s5233_s4 = inlined_call_operand.vmem [shape: f32[5,32], index: 4, kind: input, shape index: {}]   ;;  %s5234_s5 = inlined_call_operand.vmem [shape: f32[10,10], index: 5, kind: input, shape index: {}]   ;;  %s5235_s6 = inlined_call_operand.vmem [shape: f32[2,1,32], index: 6, kind: input, shape index: {}]   ;;  %s5236_s7 = inlined_call_operand.vmem [shape: f32[2,1,32], index: 7, kind: input, shape index: {}]   ;;  %s5237_s8 = inlined_call_operand.vmem [shape: f32[2,32,32], index: 8, kind: input, shape index: {}]   ;;  %s5238_s9 = inlined_call_operand.vmem [shape: f32[2,1,32], index: 9, kind: input, shape index: {}]   ;;  %s5239_s10 = inlined_call_operand.vmem [shape: f32[2,32,32], index: 10, kind: input, shape index: {}]   ;;  %s5240_s11 = inlined_call_operand.vmem [shape: f32[2,1,32], index: 11, kind: input, shape index: {}]   ;;  %s5241_s12 = inlined_call_operand.vmem [shape: f32[2,32,32], index: 12, kind: input, shape index: {}]   ;;  %s5242_s13 = inlined_call_operand.vmem [shape: f32[2,1,32], index: 13, kind: input, shape index: {}]   ;;  %s5243_s14 = inlined_call_operand.vmem [shape: f32[2,32,32], index: 14, kind: input, shape index: {}]   ;;  %s5244_s15 = inlined_call_operand.vmem [shape: f32[2,1,32], index: 15, kind: input, shape index: {}]   ;;  %s5245_s16 = inlined_call_operand.vmem [shape: f32[2,1,32], index: 16, kind: input, shape index: {}]   ;;  %s5246_s17 = inlined_call_operand.vmem [shape: f32[2,1,32], index: 17, kind: input, shape index: {}]   ;;  %s5247_s18 = inlined_call_operand.vmem [shape: f32[2,32,64], index: 18, kind: input, shape index: {}]   ;;  %s5248_s19 = inlined_call_operand.vmem [shape: f32[2,1,64], index: 19, kind: input, shape index: {}]   ;;  %s5249_s20 = inlined_call_operand.vmem [shape: f32[2,64,32], index: 20, kind: input, shape index: {}]   ;;  %s5250_s21 = inlined_call_operand.vmem [shape: f32[2,1,32], index: 21, kind: input, shape index: {}]   ;;  %s5251_s22 = inlined_call_operand.vmem [shape: f32[1,32], index: 22, kind: input, shape index: {}]   ;;  %s5252_s23 = inlined_call_operand.vmem [shape: f32[1,32], index: 23, kind: input, shape index: {}]   ;;  %s5253_s24 = inlined_call_operand.vmem [shape: f32[32,10], index: 24, kind: input, shape index: {}]   ;;  %s5254_s25 = inlined_call_operand.vmem [shape: f32[1,10], index: 25, kind: input, shape index: {}]   ;;  %s5255_s26 = inlined_call_operand.hbm [shape: f32[2,10], index: 26, kind: output, shape index: {}]  }
   0x1   :  { %5277 = sst [smem:[#allocation7_spill]] %s5229_s0 }
   0x2   :  { %5278 = sst [smem:[#allocation8_spill]] %s5230_s1 }
   0x3   :  { %5279 = sst [smem:[#allocation9_spill]] %s5231_s2 }
   0x4   :  { %5280 = sst [smem:[#allocation10_spill]] %s5232_s3 }
   0x5   :  { %5281 = sst [smem:[#allocation11_spill]] %s5233_s4 }
   0x6   :  { %5282 = sst [smem:[#allocation12_spill]] %s5234_s5 }
   0x7   :  { %5283 = sst [smem:[#allocation13_spill]] %s5235_s6 }
   0x8   :  { %5284 = sst [smem:[#allocation14_spill]] %s5236_s7 }
   0x9   :  { %5285 = sst [smem:[#allocation15_spill]] %s5237_s8 }
   0xa   :  { %5286 = sst [smem:[#allocation16_spill]] %s5238_s9 }
   0xb   :  { %5287 = sst [smem:[#allocation17_spill]] %s5239_s10 }
   0xc   :  { %5288 = sst [smem:[#allocation18_spill]] %s5255_s26 }
   0xd   :  { %s5289_s7 = sld [smem:[#allocation8_spill]]  ;;  %v4382_v3 = vmov 0.0|0.0   ;;  %vm117_vm0 = vcmask 523264   ;;  %s5290_s4 = sld [smem:[#allocation7_spill]] }
   0xe   :  { %3943 = vmatprep.subr.bf16.mxu0 %v4382_v3 }
  0x13   :  { %v86_v0 = vld [vmem:[%s5289_s7] sm:$0xff]  ;;  %v87_v1 = vld [vmem:[%s5289_s7 + $0x8] sm:$0xff]  ;;  %v88_v2 = vld [vmem:[%s5289_s7 + $0x10] sm:$0xff] }
  0x14   :  { %v3944_v4 = vpack.c.bf16 %v87_v1, %v86_v0  ;;  %v89_v5 = vld [vmem:[%s5289_s7 + $0x18] sm:$0xff]  ;;  %v90_v7 = vld [vmem:[%s5289_s7 + $0x20] sm:$0xff]  ;;  %v91_v8 = vld [vmem:[%s5289_s7 + $0x28] sm:$0xff] }
  0x15   :  { %v3947_v6 = vpack.c.bf16 %v89_v5, %v88_v2  ;;  %v3950_v9 = vpack.c.bf16 %v91_v8, %v90_v7  ;;  %v92_v10 = vld [vmem:[%s5289_s7 + $0x30] sm:$0xff]  ;;  %v93_v11 = vld [vmem:[%s5289_s7 + $0x38] sm:$0xff]  ;;  %v85_v12 = vld [vmem:[%s5290_s4 + $0x8] sm:$0xff] }
  0x16   :  { %3945 = vmatpush1.bf16.msra.mxu0 %v3944_v4  ;;  %3378 = vmatprep.mubr.msk.f32.mxu0 %vm117_vm0, %v85_v12 }
  0x17   :  { %3946 = vmatprep.subr.bf16.mxu0 %v4382_v3 }
  0x1a   :  { %3948 = vmatpush1.bf16.msra.mxu0 %v3947_v6 }
  0x1b   :  { %3949 = vmatprep.subr.bf16.mxu0 %v4382_v3 }
  0x1c   :  { %31 = vsyncpa [#allocation5], 0  ;;  %v3953_v13 = vpack.c.bf16 %v93_v11, %v92_v10  ;;  %v94_v14 = vld [vmem:[%s5289_s7 + $0x40] sm:$0xff]  ;;  %v95_v15 = vld [vmem:[%s5289_s7 + $0x48] sm:$0xff]  ;;  %s5291_s3 = sld [smem:[#allocation11_spill]]  ;;  %s5292_s29 = sld [smem:[#allocation10_spill]] }
  0x1d   :  { %v3956_v16 = vpack.c.bf16 %v95_v15, %v94_v14  ;;  %v96_v17 = vld [vmem:[%s5289_s7 + $0x50] sm:$0xff]  ;;  %v97_v18 = vld [vmem:[%s5289_s7 + $0x58] sm:$0xff]  ;;  %v98_v20 = vld [vmem:[%s5289_s7 + $0x60] sm:$0xff]  ;;  %vm194_vm1 = vcmask 253952   ;;  %s5293_s9 = sld [smem:[#allocation9_spill]]  ;;  %vm200_vm2 = vcmask 257024  }
  0x1e   :  { %3951 = vmatpush1.bf16.msra.mxu0 %v3950_v9  ;;  %v3959_v19 = vpack.c.bf16 %v97_v18, %v96_v17  ;;  %v99_v21 = vld [vmem:[%s5289_s7 + $0x68] sm:$0xff]  ;;  %v100_v23 = vld [vmem:[%s5289_s7 + $0x70] sm:$0xff]  ;;  %v101_v24 = vld [vmem:[%s5289_s7 + $0x78] sm:$0xff]  ;;  %vm206_vm3 = vcmask 261124   ;;  %vm214_vm4 = vcmask 261120   ;;  %vm218_vm5 = vcmask 254976  }
  0x1f   :  { %3952 = vmatprep.subr.bf16.mxu0 %v4382_v3  ;;  %v3962_v22 = vpack.c.bf16 %v99_v21, %v98_v20  ;;  %v3965_v25 = vpack.c.bf16 %v101_v24, %v100_v23  ;;  %v102_v26 = vld [vmem:[%s5289_s7 + $0x80] sm:$0xff]  ;;  %v103_v27 = vld [vmem:[%s5289_s7 + $0x88] sm:$0xff]  ;;  %v104_v29 = vld [vmem:[%s5289_s7 + $0x90] sm:$0xff]  ;;  %s5294_s2 = sld [smem:[#allocation15_spill]]  ;;  %s5296_s30 = sld [smem:[#allocation13_spill]]  ;;  %vm525_vm6 = vcmask 64512  }
  0x20   :  { %v3968_v28 = vpack.c.bf16 %v103_v27, %v102_v26  ;;  %v105_v30 = vld [vmem:[%s5289_s7 + $0x98] sm:$0xff]  ;;  %v106_v32 = vld [vmem:[%s5289_s7 + $0xa0] sm:$0xff]  ;;  %v107_v33 = vld [vmem:[%s5289_s7 + $0xa8] sm:$0xff]  ;;  %s5297_s6 = sld [smem:[#allocation14_spill]]  ;;  %s5298_s28 = sld [smem:[#allocation16_spill]]  ;;  %vm643_vm8 = vcmask 1041408  }
  0x21   :  { %v3971_v31 = vpack.c.bf16 %v105_v30, %v104_v29  ;;  %v3974_v34 = vpack.c.bf16 %v107_v33, %v106_v32  ;;  %v108_v35 = vld [vmem:[%s5289_s7 + $0xb0] sm:$0xff]  ;;  %v109_v36 = vld [vmem:[%s5289_s7 + $0xb8] sm:$0xff]  ;;  %v84_v38 = vld [vmem:[%s5290_s4] sm:$0xff]  ;;  %vm4383_vm9 = vmmov 1   ;;  %s5303_s10 = sld [smem:[#allocation12_spill]]  ;;  %vm617_vm11 = vcmask 74752  }
  0x22   :  { %3954 = vmatpush1.bf16.msra.mxu0 %v3953_v13  ;;  %v3977_v37 = vpack.c.bf16 %v109_v36, %v108_v35  ;;  %v191_v39 = vld [vmem:[%s5291_s3] sm:$0x1f]  ;;  %v440_v29 = vld [vmem:[%s5241_s12 + $0x8] sm:$0xff]  ;;  %v442_v32 = vld [vmem:[%s5241_s12 + $0x18] sm:$0xff]  ;;  %vm613_vm12 = vcmask 80896   ;;  %s5274_s3 = smov 120  }
  0x23   :  { %3955 = vmatprep.subr.bf16.mxu0 %v4382_v3  ;;  %v192_v40 = vld [vmem:[%s5292_s29] sm:$0x1]  ;;  %v197_v43 = vrot.slane %v191_v39, 1  ;;  %v203_v44 = vrot.slane %v191_v39, 5  ;;  %s5295_s29 = sld [smem:[#allocation17_spill]]  ;;  %vm4686_vm7 = vmpackc.low %vm525_vm6, %vm525_vm6  ;;  %s5270_s8 = smov 112  }
  0x24   :  { %v193_v41 = vadd.f32 %v192_v40, %v191_v39  ;;  %v3377_v42 = vld [vmem:[%s5293_s9] ss:$0 sm:$0xff]  ;;  %vm4701_vm10 = vmpackc.low %vm643_vm8, %vm4383_vm9  ;;  %vm723_vm13 = vcmask 58368   ;;  %s5268_s7 = smov 104   ;;  %s5266_s0 = smov 8   ;;  %vm937_vm14 = vcmask 123968  }
  0x25   :  { %v259_v0 = vld [vmem:[%s5294_s2] sm:$0xff]  ;;  %v260_v1 = vld [vmem:[%s5294_s2 + $0x8] sm:$0xff]  ;;  %v261_v2 = vld [vmem:[%s5294_s2 + $0x10] sm:$0xff]  ;;  %s5264_s9 = smov 16   ;;  %vm1150_vm15 = vcmask 189568   ;;  %s5272_s4 = smov 24  }
  0x26   :  { %3957 = vmatpush1.bf16.msra.mxu0 %v3956_v16  ;;  %195 = vst.msk [vmem:[#allocation2] sm:$0x1] %vm194_vm1, %v193_v41  ;;  %202 = vst.msk [vmem:[#allocation2 + $0x5] sm:$0x1] %vm194_vm1, %v193_v41  ;;  %v262_v4 = vld [vmem:[%s5294_s2 + $0x18] sm:$0xff]  ;;  %vm935_vm1 = vcmask 130112  }
  0x27   :  { %3958 = vmatprep.subr.bf16.mxu0 %v4382_v3  ;;  %v3983_v5 = vpack.c.bf16 %v262_v4, %v261_v2  ;;  %v3379_v16 = vld [vmem:[%s5296_s30] ss:$0 sm:$0xff]  ;;  %vm1361_vm8 = vcmask 261312   ;;  %s5306_s1 = smov 104   ;;  %s5308_s27 = smov 16  }
  0x28   :  { %v3380_v18 = vld [vmem:[%s5297_s6] ss:$0 sm:$0xff] }
  0x29   :  { %v353_v6 = vld [vmem:[%s5295_s29] sm:$0xff]  ;;  %v354_v7 = vld [vmem:[%s5295_s29 + $0x8] sm:$0xff]  ;;  %v355_v23 = vld [vmem:[%s5295_s29 + $0x10] sm:$0xff] }
  0x2a   :  { %3960 = vmatpush1.bf16.msra.mxu0 %v3959_v19  ;;  %v3987_v8 = vpack.c.bf16 %v354_v7, %v353_v6  ;;  %v356_v24 = vld [vmem:[%s5295_s29 + $0x18] sm:$0xff]  ;;  %v3384_v39 = vld [vmem:[%s5240_s11] ss:$0 sm:$0xff] }
  0x2b   :  { %3961 = vmatprep.subr.bf16.mxu0 %v4382_v3  ;;  %v3991_v27 = vpack.c.bf16 %v356_v24, %v355_v23 }
  0x2e   :  { %3963 = vmatpush1.bf16.msra.mxu0 %v3962_v22 }
  0x2f   :  { %3964 = vmatprep.subr.bf16.mxu0 %v4382_v3 }
  0x32   :  { %3966 = vmatpush1.bf16.msra.mxu0 %v3965_v25 }
  0x33   :  { %3967 = vmatprep.subr.bf16.mxu0 %v4382_v3 }
  0x36   :  { %3969 = vmatpush1.bf16.msra.mxu0 %v3968_v28  ;;  %v439_v28 = vld [vmem:[%s5241_s12] sm:$0xff] }
  0x37   :  { %3970 = vmatprep.subr.bf16.mxu0 %v4382_v3  ;;  %v3995_v30 = vpack.c.bf16 %v440_v29, %v439_v28 }
  0x3a   :  { %3972 = vmatpush1.bf16.msra.mxu0 %v3971_v31  ;;  %v441_v31 = vld [vmem:[%s5241_s12 + $0x10] sm:$0xff] }
  0x3b   :  { %3973 = vmatprep.subr.bf16.mxu0 %v4382_v3  ;;  %v3999_v33 = vpack.c.bf16 %v442_v32, %v441_v31 }
  0x3e   :  { %3975 = vmatpush1.bf16.msra.mxu0 %v3974_v34  ;;  %v3381_v34 = vld [vmem:[%s5298_s28] ss:$0 sm:$0xff] }
  0x3f   :  { %3976 = vmatprep.subr.bf16.mxu0 %v4382_v3  ;;  %v3979_v3 = vpack.c.bf16 %v260_v1, %v259_v0 }
  0x41   :  { %3980 = vmatprep.subr.bf16.mxu1 %v3979_v3 }
  0x42   :  { %3978 = vmatpush1.bf16.msra.mxu0 %v3977_v37  ;;  %3982 = vmatpush3.bf16.msra.mxu1 %v3979_v3 }
  0x43   :  { %3984 = vmatprep.subr.bf16.mxu1 %v3983_v5 }
  0x45   :  { %186 = vmatmul.mubr.f32.vlgmr.msra.gmra.mrb[0].mxu0 %v84_v38 }
  0x46   :  { %3986 = vmatpush3.bf16.msra.mxu1 %v3983_v5 }
  0x47   :  { %3988 = vmatprep.subr.bf16.mxu1 %v3987_v8 }
 0x118   :  { %v187_v45 = vpop.f32.mrb[0].mxu0 }
 0x119   :  { %v188_v46 = vadd.f32 %v3377_v42, %v187_v45  ;;  %v189_v47 = vpop.f32.mrb[1].mxu0 }
 0x11a   :  { %v3387_v47 = vld [vmem:[%s5242_s13] ss:$0 sm:$0xff] }
 0x11b   :  { %v199_v48 = vadd.f32 %v197_v43, %v188_v46  ;;  %v205_v49 = vadd.f32 %v203_v44, %v188_v46 }
 0x11d   :  { %201 = vst.msk [vmem:[#allocation2 + $0x1] sm:$0xf] %vm200_vm2, %v199_v48  ;;  %vm1148_vm2 = vcmask 195712  }
 0x11e   :  { %207 = vst.msk [vmem:[#allocation2 + $0x2] sm:$0xf0] %vm206_vm3, %v205_v49  ;;  %vm1363_vm3 = vcmask 255168  }
 0x125   :  { %v4614_v50 = vld [vmem:[#allocation2] sm:$0xff]  ;;  %v4618_v52 = vld [vmem:[#allocation2 + $0x8] sm:$0x3] }
 0x126   :  { %v215_v51 = vsel %vm214_vm4, %v4614_v50, 0.0  ;;  %v219_v53 = vsel %vm218_vm5, %v4618_v52, 0.0 }
 0x127   :  { %216 = vadd.xlane.f32.xlu0 %v215_v51 }
 0x12b   :  { %220 = vadd.xlane.f32.xlu0 %v219_v53 }
 0x1b4   :  { %v217_v54 = vpop.xlane.xlu0 %216 }
 0x1b5   :  { %v223_v55 = vmul.f32 0.03125, %v217_v54 }
 0x1b7   :  { %v225_v56 = vsub.f32 %v4614_v50, %v223_v55 }
 0x1b8   :  { %v221_v57 = vpop.xlane.xlu0 %220 }
 0x1b9   :  { %v224_v58 = vmul.f32 0.03125, %v221_v57  ;;  %v227_v59 = vmul.f32 %v225_v56, %v225_v56 }
 0x1bb   :  { %v226_v60 = vsub.f32 %v4618_v52, %v224_v58  ;;  %v229_v61 = vsel %vm214_vm4, %v227_v59, 0.0  ;;  %v4716_v59 = vld [vmem:[%s5303_s10 + $0x8] sm:$0x3] }
 0x1bc   :  { %230 = vadd.xlane.f32.xlu1 %v229_v61 }
 0x1bd   :  { %v228_v62 = vmul.f32 %v226_v60, %v226_v60 }
 0x1bf   :  { %v232_v63 = vsel %vm218_vm5, %v228_v62, 0.0 }
 0x1c0   :  { %233 = vadd.xlane.f32.xlu1 %v232_v63 }
 0x249   :  { %v231_v9 = vpop.xlane.xlu1 %230 }
 0x24a   :  { %v235_v10 = vmul.f32 0.03125, %v231_v9 }
 0x24c   :  { %v237_v11 = vadd.f32 1e-12, %v235_v10 }
 0x24d   :  { %v234_v12 = vpop.xlane.xlu1 %233 }
 0x24e   :  { %4264 = vrsqrt.f32 %v237_v11  ;;  %v236_v13 = vmul.f32 0.03125, %v234_v12 }
 0x250   :  { %v238_v14 = vadd.f32 1e-12, %v236_v13 }
 0x252   :  { %4266 = vrsqrt.f32 %v238_v14 }
 0x258   :  { %v4265_v15 = vpop.eup %4264 }
 0x259   :  { %v241_v17 = vmul.f32 %v4265_v15, %v225_v56 }
 0x25b   :  { %v249_v19 = vmul.f32 %v3379_v16, %v241_v17 }
 0x25c   :  { %v4267_v20 = vpop.eup %4266 }
 0x25d   :  { %v242_v21 = vmul.f32 %v4267_v20, %v226_v60  ;;  %v257_v22 = vadd.f32 %v3380_v18, %v249_v19  ;;  %v4721_v60 = vld [vmem:[%s5303_s10] sm:$0xff] }
 0x25f   :  { %v250_v25 = vmul.f32 %v3379_v16, %v242_v21  ;;  %3680 = vmatprep.mubr.msk.f32.mxu1 %vm214_vm4, %v257_v22 }
 0x261   :  { %v258_v26 = vadd.f32 %v3380_v18, %v250_v25 }
 0x263   :  { %3681 = vmatmul.mubr.msk.f32.vlgmr.msra.gmra.mrb[0].mxu1 %vm214_vm4, %v258_v26 }
 0x264   :  { %3990 = vmatpush3.bf16.msra.mxu1 %v3987_v8  ;;  %3691 = vmatprep.mubr.msk.f32.mxu1 %vm214_vm4, %v257_v22 }
 0x265   :  { %3992 = vmatprep.subr.bf16.mxu1 %v3991_v27 }
 0x268   :  { %3994 = vmatpush3.bf16.msra.mxu1 %v3991_v27 }
 0x269   :  { %3996 = vmatprep.subr.bf16.mxu1 %v3995_v30 }
 0x26b   :  { %3692 = vmatmul.mubr.msk.f32.vlgmr.msra.gmra.mrb[2].mxu1 %vm214_vm4, %v258_v26 }
 0x26c   :  { %3998 = vmatpush3.bf16.msra.mxu1 %v3995_v30  ;;  %3702 = vmatprep.mubr.msk.f32.mxu1 %vm214_vm4, %v257_v22 }
 0x26d   :  { %4000 = vmatprep.subr.bf16.mxu1 %v3999_v33 }
 0x270   :  { %4002 = vmatpush3.bf16.msra.mxu1 %v3999_v33 }
 0x273   :  { %3703 = vmatmul.mubr.msk.f32.vlgmr.msra.gmra.mrb[4].mxu1 %vm214_vm4, %v258_v26 }
 0x336   :  { %v3682_v35 = vpop.f32.mrb[0].mxu1 }
 0x337   :  { %v342_v36 = vpop.f32.mrb[1].mxu1  ;;  %v348_v48 = vadd.f32 %v3682_v35, %v3381_v34 }
 0x338   :  { %v343_v37 = vadd.f32 %v3381_v34, %v342_v36 }
 0x339   :  { %v4699_v55 = vmul.f32 0.35355338, %v348_v48 }
 0x33a   :  { %v4677_v38 = vmul.f32 0.35355338, %v343_v37 }
 0x33c   :  { %3709 = vmatprep.mubr.msk.f32.mxu1 %vm525_vm6, %v4677_v38 }
 0x33e   :  { %v3693_v40 = vpop.f32.mrb[2].mxu1 }
 0x33f   :  { %v436_v41 = vadd.f32 %v3693_v40, %v3384_v39  ;;  %v430_v42 = vpop.f32.mrb[3].mxu1 }
 0x340   :  { %v431_v43 = vadd.f32 %v3384_v39, %v430_v42 }
 0x342   :  { %v4003_v45 = vpack.c.bf16 %v436_v41, %v431_v43  ;;  %v4690_v46 = vpack.i.bf16 %v436_v41, %v431_v43 }
 0x344   :  { %4005 = vmatprep.subr.msk.bf16.mxu1 %vm4686_vm7, %v4003_v45 }
 0x345   :  { %4008 = vmatpush3.bf16.xpose.msk.msra.mxu1 %vm4686_vm7, %v4003_v45 }
 0x346   :  { %v3704_v49 = vpop.f32.mrb[4].mxu1 }
 0x347   :  { %v522_v51 = vadd.f32 %v3704_v49, %v3387_v47  ;;  %v516_v53 = vpop.f32.mrb[5].mxu1 }
 0x348   :  { %v517_v54 = vadd.f32 %v3387_v47, %v516_v53 }
 0x34a   :  { %v4009_v57 = vpack.c.bf16 %v522_v51, %v517_v54  ;;  %v4705_v58 = vpack.i.bf16 %v522_v51, %v517_v54 }
 0x34c   :  { %3710 = vmatmul.mubr.msk.f32.vlgmr.msra.gmra.mrb[6].mxu1 %vm525_vm6, %v4699_v55  ;;  %4011 = vmatprep.subr.msk.bf16.mxu1 %vm4701_vm10, %v4009_v57 }
 0x34d   :  { %4014 = vmatpush3.bf16.msk.msra.mxu1 %vm4701_vm10, %v4009_v57 }
 0x41f   :  { %v3711_v61 = vpop.f32.mrb[6].mxu1 }
 0x420   :  { %v610_v62 = vadd.f32 %v3711_v61, %v4716_v59  ;;  %v604_v63 = vpop.f32.mrb[7].mxu1 }
 0x421   :  { %v605_v0 = vadd.f32 %v604_v63, %v4721_v60 }
 0x422   :  { %v618_v1 = vsel %vm617_vm11, %v610_v62, -inf }
 0x423   :  { %619 = vmax.xlane.f32.xlu1 %v618_v1  ;;  %v614_v2 = vsel %vm613_vm12, %v605_v0, -inf }
 0x424   :  { %615 = vmax.xlane.f32.xlu0 %v614_v2 }
 0x4b0   :  { %v620_v3 = vpop.xlane.xlu1 %619 }
 0x4b1   :  { %v622_v4 = vsub.f32 %v610_v62, %v620_v3  ;;  %v616_v5 = vpop.xlane.xlu0 %615 }
 0x4b2   :  { %v621_v6 = vsub.f32 %v605_v0, %v616_v5 }
 0x4b3   :  { %v625_v7 = vmul.f32 1.442695, %v622_v4 }
 0x4b4   :  { %v623_v8 = vmul.f32 1.442695, %v621_v6 }
 0x4b5   :  { %4268 = vpow2.f32 %v625_v7 }
 0x4b6   :  { %4270 = vpow2.f32 %v623_v8 }
 0x4bf   :  { %v4269_v9 = vpop.eup %4268 }
 0x4c0   :  { %v4271_v10 = vpop.eup %4270  ;;  %v630_v11 = vsel %vm617_vm11, %v4269_v9, 0.0 }
 0x4c1   :  { %631 = vadd.xlane.f32.xlu1 %v630_v11  ;;  %v627_v12 = vsel %vm613_vm12, %v4271_v10, 0.0 }
 0x4c2   :  { %628 = vadd.xlane.f32.xlu0 %v627_v12 }
 0x4d2   :  { %725 = vrot.lane.b32.xlu1 %v4677_v38, %s5274_s3 }
 0x4d6   :  { %4210 = vrot.lane.b32.xlu1 %v4690_v46, %s5270_s8 }
 0x4d8   :  { %4205 = vrot.lane.b32.xlu0 %v4690_v46, %s5274_s3 }
 0x4da   :  { %727 = vrot.lane.b32.xlu1 %v4699_v55, %s5274_s3 }
 0x4dc   :  { %939 = vrot.lane.b32.xlu0 %v4677_v38, %s5270_s8 }
 0x4de   :  { %941 = vrot.lane.b32.xlu1 %v4699_v55, %s5270_s8 }
 0x54e   :  { %v632_v13 = vpop.xlane.xlu1 %631 }
 0x54f   :  { %4272 = vrcp.f32 %v632_v13  ;;  %v629_v14 = vpop.xlane.xlu0 %628 }
 0x550   :  { %4274 = vrcp.f32 %v629_v14 }
 0x552   :  { %v726_v15 = vpop.permute.xlu1 %725 }
 0x553   :  { %v4206_v16 = vpop.permute.xlu0 %4205 }
 0x554   :  { %v4208_v17 = vunpack.i.h.bf16 %v4206_v16  ;;  %v4207_v18 = vunpack.i.l.bf16 %v4206_v16 }
 0x556   :  { %v4015_v19 = vpack.c.bf16 %v4208_v17, %v4207_v18  ;;  %v4211_v20 = vpop.permute.xlu1 %4210 }
 0x557   :  { %v4213_v21 = vunpack.i.h.bf16 %v4211_v20  ;;  %v4212_v22 = vunpack.i.l.bf16 %v4211_v20  ;;  %v940_v23 = vpop.permute.xlu0 %939 }
 0x558   :  { %4017 = vmatprep.subr.msk.bf16.mxu1 %vm4686_vm7, %v4015_v19  ;;  %3737 = vmatprep.mubr.msk.f32.mxu0 %vm525_vm6, %v940_v23 }
 0x559   :  { %v4273_v24 = vpop.eup %4272  ;;  %v4027_v25 = vpack.c.bf16 %v4213_v21, %v4212_v22 }
 0x55a   :  { %v4275_v26 = vpop.eup %4274  ;;  %v636_v28 = vmul.f32 %v4273_v24, %v4269_v9  ;;  %v728_v29 = vpop.permute.xlu1 %727 }
 0x55b   :  { %4029 = vmatprep.subr.msk.bf16.mxu0 %vm4686_vm7, %v4027_v25  ;;  %v635_v27 = vmul.f32 %v4275_v26, %v4271_v10 }
 0x55c   :  { %4032 = vmatpush3.bf16.xpose.msk.msra.mxu0 %vm4686_vm7, %v4027_v25 }
 0x55d   :  { %3716 = vmatprep.mubr.msk.f32.mxu1 %vm613_vm12, %v635_v27 }
 0x55e   :  { %3717 = vmatmul.mubr.msk.f32.vlgmr.msra.gmra.mrb[8].mxu1 %vm613_vm12, %v636_v28  ;;  %v942_v30 = vpop.permute.xlu1 %941 }
 0x55f   :  { %4020 = vmatpush3.bf16.xpose.msk.msra.mxu1 %vm4686_vm7, %v4015_v19  ;;  %3723 = vmatprep.mubr.msk.f32.mxu1 %vm525_vm6, %v726_v15 }
 0x563   :  { %3738 = vmatmul.mubr.msk.f32.vlgmr.msra.gmra.mrb[2].mxu0 %vm525_vm6, %v942_v30 }
 0x566   :  { %3724 = vmatmul.mubr.msk.f32.vlgmr.msra.gmra.mrb[10].mxu1 %vm525_vm6, %v728_v29 }
 0x631   :  { %v3718_v31 = vpop.f32.mrb[8].mxu1 }
 0x632   :  { %724 = vst.msk [vmem:[#allocation3 + $0x8] sm:$0x3] %vm723_vm13, %v3718_v31  ;;  %v713_v32 = vpop.f32.mrb[9].mxu1 }
 0x633   :  { %722 = vst.msk [vmem:[#allocation3] sm:$0xff] %vm525_vm6, %v713_v32 }
 0x636   :  { %v3739_v33 = vpop.f32.mrb[2].mxu0 }
 0x637   :  { %v1021_v34 = vpop.f32.mrb[3].mxu0  ;;  %v1027_v43 = vadd.f32 %v3739_v33, %v4716_v59 }
 0x638   :  { %v1022_v41 = vadd.f32 %v1021_v34, %v4721_v60 }
 0x639   :  { %v3725_v35 = vpop.f32.mrb[10].mxu1  ;;  %v1033_v47 = vsel %vm617_vm11, %v1027_v43, -inf }
 0x63a   :  { %v813_v36 = vadd.f32 %v3725_v35, %v4716_v59  ;;  %v807_v37 = vpop.f32.mrb[11].mxu1  ;;  %v1030_v45 = vsel %vm613_vm12, %v1022_v41, -inf }
 0x63b   :  { %v808_v39 = vadd.f32 %v807_v37, %v4721_v60 }
 0x63c   :  { %v819_v40 = vsel %vm617_vm11, %v813_v36, -inf }
 0x63d   :  { %820 = vmax.xlane.f32.xlu1 %v819_v40  ;;  %v816_v42 = vsel %vm613_vm12, %v808_v39, -inf }
 0x63e   :  { %817 = vmax.xlane.f32.xlu0 %v816_v42 }
 0x642   :  { %1031 = vmax.xlane.f32.xlu0 %v1030_v45 }
 0x646   :  { %1034 = vmax.xlane.f32.xlu0 %v1033_v47 }
 0x6ca   :  { %v821_v51 = vpop.xlane.xlu1 %820 }
 0x6cb   :  { %v818_v48 = vpop.xlane.xlu0 %817  ;;  %v823_v57 = vsub.f32 %v813_v36, %v821_v51 }
 0x6cc   :  { %v822_v49 = vsub.f32 %v808_v39, %v818_v48 }
 0x6cd   :  { %v826_v1 = vmul.f32 1.442695, %v823_v57 }
 0x6ce   :  { %v824_v61 = vmul.f32 1.442695, %v822_v49 }
 0x6cf   :  { %v1032_v53 = vpop.xlane.xlu0 %1031 }
 0x6d0   :  { %v1036_v54 = vsub.f32 %v1022_v41, %v1032_v53 }
 0x6d2   :  { %v1038_v62 = vmul.f32 1.442695, %v1036_v54 }
 0x6d3   :  { %v1035_v63 = vpop.xlane.xlu0 %1034 }
 0x6d4   :  { %4276 = vpow2.f32 %v1038_v62  ;;  %v1037_v0 = vsub.f32 %v1027_v43, %v1035_v63 }
 0x6d5   :  { %4278 = vpow2.f32 %v824_v61 }
 0x6d6   :  { %v1040_v2 = vmul.f32 1.442695, %v1037_v0 }
 0x6d8   :  { %4280 = vpow2.f32 %v1040_v2 }
 0x6d9   :  { %4282 = vpow2.f32 %v826_v1 }
 0x6de   :  { %v4277_v3 = vpop.eup %4276 }
 0x6df   :  { %v1042_v4 = vsel %vm613_vm12, %v4277_v3, 0.0  ;;  %v4279_v5 = vpop.eup %4278 }
 0x6e0   :  { %1043 = vadd.xlane.f32.xlu0 %v1042_v4  ;;  %v828_v7 = vsel %vm613_vm12, %v4279_v5, 0.0 }
 0x6e2   :  { %v4281_v6 = vpop.eup %4280 }
 0x6e3   :  { %v1045_v8 = vsel %vm617_vm11, %v4281_v6, 0.0  ;;  %v4283_v9 = vpop.eup %4282 }
 0x6e4   :  { %829 = vadd.xlane.f32.xlu0 %v828_v7  ;;  %1046 = vadd.xlane.f32.xlu1 %v1045_v8  ;;  %v831_v10 = vsel %vm617_vm11, %v4283_v9, 0.0 }
 0x6e8   :  { %832 = vadd.xlane.f32.xlu1 %v831_v10 }
 0x6f9   :  { %4220 = vrot.lane.b32.xlu1 %v4705_v58, %s5270_s8 }
 0x6fa   :  { %4215 = vrot.lane.b32.xlu0 %v4705_v58, %s5274_s3 }
 0x6fd   :  { %4225 = vrot.lane.b32.xlu1 %v4690_v46, %s5268_s7 }
 0x6fe   :  { %1154 = vrot.lane.b32.xlu0 %v4699_v55, %s5268_s7 }
 0x701   :  { %1152 = vrot.lane.b32.xlu1 %v4677_v38, %s5268_s7 }
 0x76d   :  { %v1044_v11 = vpop.xlane.xlu0 %1043 }
 0x771   :  { %v1047_v12 = vpop.xlane.xlu1 %1046  ;;  %v830_v13 = vpop.xlane.xlu0 %829 }
 0x772   :  { %4284 = vrcp.f32 %v830_v13  ;;  %v1367_v13 = vld [vmem:[%s5243_s14] sm:$0xff] }
 0x773   :  { %4286 = vrcp.f32 %v1044_v11 }
 0x775   :  { %v833_v14 = vpop.xlane.xlu1 %832  ;;  %v4216_v15 = vpop.permute.xlu0 %4215 }
 0x776   :  { %4288 = vrcp.f32 %v833_v14  ;;  %v4218_v16 = vunpack.i.h.bf16 %v4216_v15  ;;  %v4217_v17 = vunpack.i.l.bf16 %v4216_v15  ;;  %v1368_v14 = vld [vmem:[%s5243_s14 + $0x8] sm:$0xff] }
 0x777   :  { %4290 = vrcp.f32 %v1047_v12  ;;  %v4051_v15 = vpack.c.bf16 %v1368_v14, %v1367_v13  ;;  %v1622_v13 = vld [vmem:[%s5249_s20 + $0x28] sm:$0xff] }
 0x778   :  { %v4021_v18 = vpack.c.bf16 %v4218_v16, %v4217_v17  ;;  %v1369_v16 = vld [vmem:[%s5243_s14 + $0x10] sm:$0xff]  ;;  %v1370_v17 = vld [vmem:[%s5243_s14 + $0x18] sm:$0xff] }
 0x779   :  { %v4221_v19 = vpop.permute.xlu1 %4220  ;;  %v1155_v33 = vpop.permute.xlu0 %1154  ;;  %4052 = vmatprep.subr.bf16.mxu0 %v4051_v15 }
 0x77a   :  { %v4223_v46 = vunpack.i.h.bf16 %v4221_v19  ;;  %v4222_v20 = vunpack.i.l.bf16 %v4221_v19  ;;  %4023 = vmatprep.subr.msk.bf16.mxu1 %vm4701_vm10, %v4021_v18  ;;  %4054 = vmatpush3.bf16.msra.mxu0 %v4051_v15  ;;  %v1623_v15 = vld [vmem:[%s5249_s20 + $0x30] sm:$0xff] }
 0x77b   :  { %4026 = vmatpush3.bf16.msk.msra.mxu1 %vm4701_vm10, %v4021_v18  ;;  %v4055_v18 = vpack.c.bf16 %v1370_v17, %v1369_v16  ;;  %v1624_v16 = vld [vmem:[%s5249_s20 + $0x38] sm:$0xff] }
 0x77c   :  { %v4033_v38 = vpack.c.bf16 %v4223_v46, %v4222_v20  ;;  %v4285_v55 = vpop.eup %4284  ;;  %v4079_v17 = vpack.c.bf16 %v1624_v16, %v1623_v15 }
 0x77d   :  { %v4226_v21 = vpop.permute.xlu1 %4225  ;;  %v836_v22 = vmul.f32 %v4285_v55, %v4279_v5  ;;  %v4287_v23 = vpop.eup %4286  ;;  %4056 = vmatprep.subr.bf16.mxu0 %v4055_v18 }
 0x77e   :  { %4035 = vmatprep.subr.msk.bf16.mxu1 %vm4701_vm10, %v4033_v38  ;;  %v4228_v24 = vunpack.i.h.bf16 %v4226_v21  ;;  %v4227_v25 = vunpack.i.l.bf16 %v4226_v21  ;;  %v1050_v29 = vmul.f32 %v4287_v23, %v4277_v3  ;;  %4058 = vmatpush3.bf16.msra.mxu0 %v4055_v18  ;;  %v3420_v23 = vld [vmem:[%s5244_s15] ss:$0 sm:$0xff] }
 0x77f   :  { %3730 = vmatprep.mubr.msk.f32.mxu1 %vm613_vm12, %v836_v22  ;;  %v3423_v18 = vld [vmem:[%s5248_s19] ss:$0 sm:$0xff] }
 0x780   :  { %v4289_v26 = vpop.eup %4288  ;;  %v4039_v30 = vpack.c.bf16 %v4228_v24, %v4227_v25 }
 0x781   :  { %v837_v27 = vmul.f32 %v4289_v26, %v4283_v9  ;;  %v4291_v28 = vpop.eup %4290  ;;  %v1153_v32 = vpop.permute.xlu1 %1152 }
 0x782   :  { %v1051_v31 = vmul.f32 %v4291_v28, %v4281_v6 }
 0x783   :  { %3731 = vmatmul.mubr.msk.f32.vlgmr.msra.gmra.mrb[12].mxu1 %vm613_vm12, %v837_v27 }
 0x784   :  { %4038 = vmatpush3.bf16.msk.msra.mxu1 %vm4701_vm10, %v4033_v38  ;;  %3744 = vmatprep.mubr.msk.f32.mxu1 %vm613_vm12, %v1050_v29 }
 0x785   :  { %4041 = vmatprep.subr.msk.bf16.mxu1 %vm4686_vm7, %v4039_v30 }
 0x787   :  { %3745 = vmatmul.mubr.msk.f32.vlgmr.msra.gmra.mrb[14].mxu1 %vm613_vm12, %v1051_v31 }
 0x788   :  { %3751 = vmatprep.mubr.msk.f32.mxu1 %vm525_vm6, %v1153_v32 }
 0x78d   :  { %4044 = vmatpush3.bf16.xpose.msk.msra.mxu1 %vm4686_vm7, %v4039_v30 }
 0x794   :  { %3752 = vmatmul.mubr.msk.f32.vlgmr.msra.gmra.mrb[16].mxu1 %vm525_vm6, %v1155_v33 }
 0x856   :  { %v3732_v34 = vpop.f32.mrb[12].mxu1 }
 0x857   :  { %v918_v35 = vpop.f32.mrb[13].mxu1 }
 0x85a   :  { %v3746_v36 = vpop.f32.mrb[14].mxu1 }
 0x85b   :  { %v1131_v37 = vpop.f32.mrb[15].mxu1 }
 0x867   :  { %v3753_v39 = vpop.f32.mrb[16].mxu1 }
 0x868   :  { %v1240_v40 = vadd.f32 %v3753_v39, %v4716_v59  ;;  %v1234_v41 = vpop.f32.mrb[17].mxu1 }
 0x869   :  { %v1235_v42 = vadd.f32 %v1234_v41, %v4721_v60  ;;  %v1508_v41 = vld [vmem:[%s5247_s18 + $0x8] sm:$0xff] }
 0x86a   :  { %v1246_v43 = vsel %vm617_vm11, %v1240_v40, -inf }
 0x86b   :  { %1247 = vmax.xlane.f32.xlu0 %v1246_v43  ;;  %v1243_v45 = vsel %vm613_vm12, %v1235_v42, -inf  ;;  %v1509_v43 = vld [vmem:[%s5247_s18 + $0x10] sm:$0xff] }
 0x86c   :  { %1244 = vmax.xlane.f32.xlu1 %v1243_v45  ;;  %v1510_v45 = vld [vmem:[%s5247_s18 + $0x18] sm:$0xff] }
 0x87d   :  { %4230 = vrot.lane.b32.xlu1 %v4705_v58, %s5268_s7 }
 0x881   :  { %931 = vrot.lane.b32.xlu1 %v3732_v34, %s5266_s0 }
 0x885   :  { %1142 = vrot.lane.b32.xlu1 %v1131_v37, %s5264_s9 }
 0x889   :  { %1144 = vrot.lane.b32.xlu1 %v3746_v36, %s5264_s9 }
 0x8f8   :  { %v1248_v47 = vpop.xlane.xlu0 %1247 }
 0x8f9   :  { %v1250_v48 = vsub.f32 %v1240_v40, %v1248_v47  ;;  %v1245_v49 = vpop.xlane.xlu1 %1244  ;;  %v1507_v40 = vld [vmem:[%s5247_s18] sm:$0xff]  ;;  %v4063_v47 = vpack.c.bf16 %v1510_v45, %v1509_v43 }
 0x8fa   :  { %v1249_v51 = vsub.f32 %v1235_v42, %v1245_v49  ;;  %v4059_v42 = vpack.c.bf16 %v1508_v41, %v1507_v40  ;;  %v3428_v40 = vld [vmem:[%s5250_s21] ss:$0 sm:$0xff] }
 0x8fb   :  { %v1253_v53 = vmul.f32 1.442695, %v1250_v48 }
 0x8fc   :  { %v1251_v54 = vmul.f32 1.442695, %v1249_v51 }
 0x8fd   :  { %v4231_v57 = vpop.permute.xlu1 %4230 }
 0x8fe   :  { %4292 = vpow2.f32 %v1251_v54  ;;  %v4233_v61 = vunpack.i.h.bf16 %v4231_v57  ;;  %v4232_v62 = vunpack.i.l.bf16 %v4231_v57 }
 0x8ff   :  { %4294 = vpow2.f32 %v1253_v53 }
 0x900   :  { %v4045_v58 = vpack.c.bf16 %v4233_v61, %v4232_v62  ;;  %v3421_v62 = vld [vmem:[%s5245_s16] ss:$0 sm:$0xff] }
 0x901   :  { %v932_v63 = vpop.permute.xlu1 %931 }
 0x902   :  { %938 = vst.msk [vmem:[#allocation3 + $0x8] sm:$0x3] %vm937_vm14, %v932_v63  ;;  %4047 = vmatprep.subr.msk.bf16.mxu1 %vm4701_vm10, %v4045_v58  ;;  %v3422_v63 = vld [vmem:[%s5246_s17] ss:$0 sm:$0xff] }
 0x903   :  { %4050 = vmatpush3.bf16.msk.msra.mxu1 %vm4701_vm10, %v4045_v58 }
 0x904   :  { %4060 = vmatprep.subr.bf16.mxu1 %v4059_v42 }
 0x905   :  { %v1143_v0 = vpop.permute.xlu1 %1142 }
 0x908   :  { %v4293_v1 = vpop.eup %4292 }
 0x909   :  { %v1145_v2 = vpop.permute.xlu1 %1144  ;;  %v1255_v3 = vsel %vm613_vm12, %v4293_v1, 0.0  ;;  %v4295_v4 = vpop.eup %4294 }
 0x90a   :  { %1151 = vst.msk [vmem:[#allocation3 + $0x8] sm:$0x3] %vm1150_vm15, %v1145_v2  ;;  %1256 = vadd.xlane.f32.xlu0 %v1255_v3  ;;  %v1258_v5 = vsel %vm617_vm11, %v4295_v4, 0.0 }
 0x90e   :  { %1259 = vadd.xlane.f32.xlu0 %v1258_v5 }
 0x924   :  { %929 = vrot.lane.b32.xlu0 %v918_v35, %s5266_s0 }
 0x997   :  { %v1257_v6 = vpop.xlane.xlu0 %1256 }
 0x998   :  { %4296 = vrcp.f32 %v1257_v6  ;;  %v1617_v6 = vld [vmem:[%s5249_s20] sm:$0xff] }
 0x99b   :  { %v1260_v7 = vpop.xlane.xlu0 %1259 }
 0x99c   :  { %4298 = vrcp.f32 %v1260_v7  ;;  %v1618_v7 = vld [vmem:[%s5249_s20 + $0x8] sm:$0xff] }
 0x99f   :  { %v930_v8 = vpop.permute.xlu0 %929 }
 0x9a0   :  { %936 = vst.msk [vmem:[#allocation3] sm:$0xff] %vm935_vm1, %v930_v8  ;;  %v4067_v8 = vpack.c.bf16 %v1618_v7, %v1617_v6  ;;  %v3435_v6 = vld [vmem:[%s5294_s2 + $0x30] sm:$0xff]  ;;  %v3436_v7 = vld [vmem:[%s5294_s2 + $0x38] sm:$0xff] }
 0x9a1   :  { %1149 = vst.msk [vmem:[#allocation3] sm:$0xff] %vm1148_vm2, %v1143_v0 }
 0x9a2   :  { %v4297_v9 = vpop.eup %4296  ;;  %4068 = vmatprep.subr.bf16.mxu0 %v4067_v8 }
 0x9a3   :  { %v1263_v10 = vmul.f32 %v4297_v9, %v4293_v1  ;;  %v1619_v9 = vld [vmem:[%s5249_s20 + $0x10] sm:$0xff] }
 0x9a5   :  { %3758 = vmatprep.mubr.msk.f32.mxu1 %vm613_vm12, %v1263_v10  ;;  %v1620_v10 = vld [vmem:[%s5249_s20 + $0x18] sm:$0xff] }
 0x9a6   :  { %v4299_v11 = vpop.eup %4298 }
 0x9a7   :  { %v1264_v12 = vmul.f32 %v4299_v11, %v4295_v4  ;;  %v1621_v11 = vld [vmem:[%s5249_s20 + $0x20] sm:$0xff] }
 0x9a8   :  { %v4075_v14 = vpack.c.bf16 %v1622_v13, %v1621_v11  ;;  %v3442_v13 = vld [vmem:[%s5295_s29 + $0x28] sm:$0xff] }
 0x9a9   :  { %3759 = vmatmul.mubr.msk.f32.vlgmr.msra.gmra.mrb[18].mxu1 %vm613_vm12, %v1264_v12  ;;  %v4071_v12 = vpack.c.bf16 %v1620_v10, %v1619_v9  ;;  %v4087_v9 = vpack.c.bf16 %v3436_v7, %v3435_v6  ;;  %v3452_v10 = vld [vmem:[%s5241_s12 + $0x38] sm:$0xff] }
 0x9aa   :  { %4062 = vmatpush3.bf16.msra.mxu1 %v4059_v42 }
 0x9ab   :  { %4064 = vmatprep.subr.bf16.mxu1 %v4063_v47 }
 0x9ae   :  { %4066 = vmatpush3.bf16.msra.mxu1 %v4063_v47 }
 0xa7c   :  { %v3760_v19 = vpop.f32.mrb[18].mxu1 }
 0xa7d   :  { %1357 = vrot.lane.b32.xlu1 %v3760_v19, %s5272_s4  ;;  %v1344_v46 = vpop.f32.mrb[19].mxu1 }
 0xa7e   :  { %1355 = vrot.lane.b32.xlu0 %v1344_v46, %s5272_s4 }
 0xaef   :  { %v1358_v20 = vpop.permute.xlu1 %1357 }
 0xaf0   :  { %1364 = vst.msk [vmem:[#allocation3 + $0x8] sm:$0x3] %vm1363_vm3, %v1358_v20  ;;  %v1356_v38 = vpop.permute.xlu0 %1355 }
 0xaf1   :  { %1362 = vst.msk [vmem:[#allocation3] sm:$0xff] %vm1361_vm8, %v1356_v38 }
 0xaf7   :  { %v1366_v21 = vld [vmem:[#allocation3 + $0x8] sm:$0x3] }
 0xaf8   :  { %v1365_v55 = vld [vmem:[#allocation3] sm:$0xff] }
 0xaf9   :  { %3769 = vmatprep.mubr.msk.f32.mxu0 %vm214_vm4, %v1365_v55 }
 0xafa   :  { %3770 = vmatmul.mubr.msk.f32.vlgmr.msra.gmra.mrb[4].mxu0 %vm214_vm4, %v1366_v21 }
 0xafb   :  { %4070 = vmatpush3.bf16.msra.mxu0 %v4067_v8  ;;  %v3451_v8 = vld [vmem:[%s5241_s12 + $0x30] sm:$0xff] }
 0xafc   :  { %4072 = vmatprep.subr.bf16.mxu0 %v4071_v12  ;;  %v4103_v11 = vpack.c.bf16 %v3452_v10, %v3451_v8 }
 0xaff   :  { %4074 = vmatpush3.bf16.msra.mxu0 %v4071_v12  ;;  %v3441_v12 = vld [vmem:[%s5295_s29 + $0x20] sm:$0xff] }
 0xb00   :  { %4076 = vmatprep.subr.bf16.mxu0 %v4075_v14 }
 0xb03   :  { %4078 = vmatpush3.bf16.msra.mxu0 %v4075_v14  ;;  %v4091_v14 = vpack.c.bf16 %v3442_v13, %v3441_v12 }
 0xb04   :  { %4080 = vmatprep.subr.bf16.mxu0 %v4079_v17 }
 0xb07   :  { %4082 = vmatpush3.bf16.msra.mxu0 %v4079_v17 }
 0xbcd   :  { %v3771_v22 = vpop.f32.mrb[4].mxu0 }
 0xbce   :  { %v1453_v24 = vadd.f32 %v3771_v22, %v4618_v52  ;;  %v1443_v25 = vpop.f32.mrb[5].mxu0 }
 0xbcf   :  { %v1452_v26 = vadd.f32 %v1443_v25, %v4614_v50 }
 0xbd0   :  { %v4842_v27 = vadd.f32 %v3420_v23, %v1453_v24 }
 0xbd1   :  { %v4844_v28 = vadd.f32 %v3420_v23, %v1452_v26 }
 0xbd2   :  { %v1468_v29 = vsel %vm218_vm5, %v4842_v27, 0.0 }
 0xbd3   :  { %1469 = vadd.xlane.f32.xlu1 %v1468_v29  ;;  %v1465_v30 = vsel %vm214_vm4, %v4844_v28, 0.0 }
 0xbd4   :  { %1466 = vadd.xlane.f32.xlu0 %v1465_v30 }
 0xc60   :  { %v1470_v31 = vpop.xlane.xlu1 %1469 }
 0xc61   :  { %v1472_v32 = vmul.f32 0.03125, %v1470_v31  ;;  %v1467_v33 = vpop.xlane.xlu0 %1466 }
 0xc62   :  { %v1471_v34 = vmul.f32 0.03125, %v1467_v33 }
 0xc63   :  { %v1474_v52 = vsub.f32 %v4842_v27, %v1472_v32 }
 0xc64   :  { %v1473_v50 = vsub.f32 %v4844_v28, %v1471_v34 }
 0xc65   :  { %v1476_v37 = vmul.f32 %v1474_v52, %v1474_v52 }
 0xc66   :  { %v1475_v35 = vmul.f32 %v1473_v50, %v1473_v50 }
 0xc67   :  { %v1480_v39 = vsel %vm218_vm5, %v1476_v37, 0.0 }
 0xc68   :  { %v1477_v36 = vsel %vm214_vm4, %v1475_v35, 0.0 }
 0xc69   :  { %1478 = vadd.xlane.f32.xlu0 %v1477_v36 }
 0xc6d   :  { %1481 = vadd.xlane.f32.xlu0 %v1480_v39 }
 0xcf6   :  { %v1479_v48 = vpop.xlane.xlu0 %1478 }
 0xcf7   :  { %v1483_v49 = vmul.f32 0.03125, %v1479_v48 }
 0xcf9   :  { %v1485_v51 = vadd.f32 1e-12, %v1483_v49 }
 0xcfa   :  { %v1482_v53 = vpop.xlane.xlu0 %1481 }
 0xcfb   :  { %4300 = vrsqrt.f32 %v1485_v51  ;;  %v1484_v54 = vmul.f32 0.03125, %v1482_v53 }
 0xcfd   :  { %v1486_v57 = vadd.f32 1e-12, %v1484_v54 }
 0xcff   :  { %4302 = vrsqrt.f32 %v1486_v57 }
 0xd05   :  { %v4301_v61 = vpop.eup %4300 }
 0xd06   :  { %v1489_v58 = vmul.f32 %v4301_v61, %v1473_v50 }
 0xd08   :  { %v1497_v0 = vmul.f32 %v3421_v62, %v1489_v58 }
 0xd09   :  { %v4303_v1 = vpop.eup %4302 }
 0xd0a   :  { %v1490_v2 = vmul.f32 %v4303_v1, %v1474_v52  ;;  %v1505_v3 = vadd.f32 %v3422_v63, %v1497_v0  ;;  %v3433_v0 = vld [vmem:[%s5294_s2 + $0x20] sm:$0xff]  ;;  %v3434_v1 = vld [vmem:[%s5294_s2 + $0x28] sm:$0xff] }
 0xd0c   :  { %v1498_v4 = vmul.f32 %v3421_v62, %v1490_v2  ;;  %3780 = vmatprep.mubr.msk.f32.mxu1 %vm214_vm4, %v1505_v3  ;;  %v4083_v2 = vpack.c.bf16 %v3434_v1, %v3433_v0  ;;  %v3449_v3 = vld [vmem:[%s5241_s12 + $0x20] sm:$0xff] }
 0xd0e   :  { %v1506_v5 = vadd.f32 %v3422_v63, %v1498_v4  ;;  %v3450_v4 = vld [vmem:[%s5241_s12 + $0x28] sm:$0xff]  ;;  %4084 = vmatprep.subr.bf16.mxu1 %v4083_v2 }
 0xd10   :  { %3781 = vmatmul.mubr.msk.f32.vlgmr.msra.gmra.mrb[20].mxu1 %vm214_vm4, %v1506_v5  ;;  %v4099_v5 = vpack.c.bf16 %v3450_v4, %v3449_v3 }
 0xd11   :  { %4086 = vmatpush3.bf16.msra.mxu1 %v4083_v2 }
 0xd12   :  { %4100 = vmatprep.subr.bf16.mxu0 %v4099_v5  ;;  %4088 = vmatprep.subr.bf16.mxu1 %v4087_v9 }
 0xd15   :  { %4090 = vmatpush3.bf16.msra.mxu1 %v4087_v9 }
 0xd16   :  { %4092 = vmatprep.subr.bf16.mxu1 %v4091_v14 }
 0xde3   :  { %v3782_v19 = vpop.f32.mrb[20].mxu1 }
 0xde4   :  { %v1596_v46 = vadd.f32 %v3782_v19, %v3423_v18  ;;  %v1590_v20 = vpop.f32.mrb[21].mxu1 }
 0xde5   :  { %v1591_v38 = vadd.f32 %v3423_v18, %v1590_v20 }
 0xde6   :  { %v1602_v55 = vmul.f32 0.044715, %v1596_v46  ;;  %v1600_v35 = vmul.f32 0.5, %v1596_v46 }
 0xde7   :  { %v1601_v21 = vmul.f32 0.044715, %v1591_v38  ;;  %v1599_v52 = vmul.f32 0.5, %v1591_v38 }
 0xde8   :  { %v1604_v22 = vmul.f32 %v1602_v55, %v1596_v46 }
 0xde9   :  { %v1603_v23 = vmul.f32 %v1601_v21, %v1591_v38 }
 0xdea   :  { %v1606_v24 = vmul.f32 %v1604_v22, %v1596_v46 }
 0xdeb   :  { %v1605_v25 = vmul.f32 %v1603_v23, %v1591_v38  ;;  %v3432_v23 = vld [vmem:[%s5297_s6 + $0x1] ss:$0 sm:$0xff] }
 0xdec   :  { %v1608_v26 = vadd.f32 %v1606_v24, %v1596_v46 }
 0xded   :  { %v1607_v29 = vadd.f32 %v1605_v25, %v1591_v38  ;;  %v3431_v38 = vld [vmem:[%s5296_s30 + $0x1] ss:$0 sm:$0xff] }
 0xdee   :  { %v1610_v30 = vmul.f32 0.7978846, %v1608_v26  ;;  %v3443_v26 = vld [vmem:[%s5295_s29 + $0x30] sm:$0xff] }
 0xdef   :  { %v1609_v31 = vmul.f32 0.7978846, %v1607_v29  ;;  %v3444_v29 = vld [vmem:[%s5295_s29 + $0x38] sm:$0xff] }
 0xdf0   :  { %4304 = vtanh.f32 %v1610_v30 }
 0xdf1   :  { %4306 = vtanh.f32 %v1609_v31 }
 0xdfa   :  { %v4305_v32 = vpop.eup %4304 }
 0xdfb   :  { %v4307_v33 = vpop.eup %4306  ;;  %v1614_v34 = vadd.f32 1.0, %v4305_v32  ;;  %v4095_v32 = vpack.c.bf16 %v3444_v29, %v3443_v26 }
 0xdfc   :  { %v1613_v50 = vadd.f32 1.0, %v4307_v33  ;;  %v3454_v33 = vld [vmem:[%s5242_s13 + $0x1] ss:$0 sm:$0xff]  ;;  %s5304_s13 = smov 120  }
 0xdfd   :  { %v1616_v37 = vmul.f32 %v1614_v34, %v1600_v35  ;;  %v3438_v34 = vld [vmem:[%s5298_s28 + $0x1] ss:$0 sm:$0xff] }
 0xdfe   :  { %v1615_v36 = vmul.f32 %v1613_v50, %v1599_v52 }
 0xe00   :  { %3799 = vmatprep.mubr.msk.f32.mxu0 %vm117_vm0, %v1615_v36 }
 0xe01   :  { %3800 = vmatmul.mubr.msk.f32.vlgmr.msra.gmra.mrb[6].mxu0 %vm117_vm0, %v1616_v37 }
 0xe02   :  { %4102 = vmatpush3.bf16.msra.mxu0 %v4099_v5 }
 0xe03   :  { %4104 = vmatprep.subr.bf16.mxu0 %v4103_v11 }
 0xe06   :  { %4106 = vmatpush3.bf16.msra.mxu0 %v4103_v11 }
 0xed4   :  { %v3801_v39 = vpop.f32.mrb[6].mxu0 }
 0xed5   :  { %v1707_v41 = vadd.f32 %v3801_v39, %v4842_v27  ;;  %v1697_v42 = vpop.f32.mrb[7].mxu0 }
 0xed6   :  { %v1706_v43 = vadd.f32 %v1697_v42, %v4844_v28 }
 0xed7   :  { %v4908_v45 = vadd.f32 %v3428_v40, %v1707_v41 }
 0xed8   :  { %v4910_v47 = vadd.f32 %v3428_v40, %v1706_v43 }
 0xed9   :  { %v1724_v48 = vsel %vm218_vm5, %v4908_v45, 0.0 }
 0xeda   :  { %1725 = vadd.xlane.f32.xlu1 %v1724_v48  ;;  %v1721_v49 = vsel %vm214_vm4, %v4910_v47, 0.0 }
 0xedb   :  { %1722 = vadd.xlane.f32.xlu0 %v1721_v49  ;;  %v3446_v49 = vld [vmem:[%s5240_s11 + $0x1] ss:$0 sm:$0xff]  ;;  %s5305_s11 = smov 112  }
 0xf67   :  { %v1726_v51 = vpop.xlane.xlu1 %1725 }
 0xf68   :  { %v1728_v53 = vmul.f32 0.03125, %v1726_v51  ;;  %v1723_v54 = vpop.xlane.xlu0 %1722 }
 0xf69   :  { %v1727_v57 = vmul.f32 0.03125, %v1723_v54 }
 0xf6a   :  { %v1730_v27 = vsub.f32 %v4908_v45, %v1728_v53 }
 0xf6b   :  { %v1729_v28 = vsub.f32 %v4910_v47, %v1727_v57 }
 0xf6c   :  { %v1732_v61 = vmul.f32 %v1730_v27, %v1730_v27 }
 0xf6d   :  { %v1731_v62 = vmul.f32 %v1729_v28, %v1729_v28 }
 0xf6e   :  { %v1736_v58 = vsel %vm218_vm5, %v1732_v61, 0.0 }
 0xf6f   :  { %1737 = vadd.xlane.f32.xlu1 %v1736_v58  ;;  %v1733_v63 = vsel %vm214_vm4, %v1731_v62, 0.0 }
 0xf70   :  { %1734 = vadd.xlane.f32.xlu0 %v1733_v63 }
 0xffc   :  { %v1738_v15 = vpop.xlane.xlu1 %1737 }
 0xffd   :  { %v1740_v16 = vmul.f32 0.03125, %v1738_v15  ;;  %v1735_v17 = vpop.xlane.xlu0 %1734 }
 0xffe   :  { %v1739_v18 = vmul.f32 0.03125, %v1735_v17 }
 0xfff   :  { %v1742_v19 = vadd.f32 1e-12, %v1740_v16 }
0x1000   :  { %v1741_v46 = vadd.f32 1e-12, %v1739_v18 }
0x1001   :  { %4308 = vrsqrt.f32 %v1742_v19 }
0x1002   :  { %4310 = vrsqrt.f32 %v1741_v46 }
0x100b   :  { %v4309_v20 = vpop.eup %4308 }
0x100c   :  { %v4311_v55 = vpop.eup %4310  ;;  %v1746_v21 = vmul.f32 %v4309_v20, %v1730_v27 }
0x100d   :  { %v1745_v22 = vmul.f32 %v4311_v55, %v1729_v28 }
0x100e   :  { %v1754_v24 = vmul.f32 %v3431_v38, %v1746_v21 }
0x100f   :  { %v1753_v25 = vmul.f32 %v3431_v38, %v1745_v22 }
0x1010   :  { %v1762_v31 = vadd.f32 %v3432_v23, %v1754_v24 }
0x1011   :  { %v1761_v30 = vadd.f32 %v3432_v23, %v1753_v25 }
0x1013   :  { %3810 = vmatprep.mubr.msk.f32.mxu1 %vm214_vm4, %v1761_v30  ;;  %3832 = vmatprep.mubr.msk.f32.mxu0 %vm214_vm4, %v1761_v30 }
0x1014   :  { %3811 = vmatmul.mubr.msk.f32.vlgmr.msra.gmra.mrb[22].mxu1 %vm214_vm4, %v1762_v31  ;;  %3833 = vmatmul.mubr.msk.f32.vlgmr.msra.gmra.mrb[8].mxu0 %vm214_vm4, %v1762_v31 }
0x1015   :  { %4094 = vmatpush3.bf16.msra.mxu1 %v4091_v14  ;;  %3821 = vmatprep.mubr.msk.f32.mxu1 %vm214_vm4, %v1761_v30 }
0x1016   :  { %4096 = vmatprep.subr.bf16.mxu1 %v4095_v32 }
0x1019   :  { %4098 = vmatpush3.bf16.msra.mxu1 %v4095_v32 }
0x101c   :  { %3822 = vmatmul.mubr.msk.f32.vlgmr.msra.gmra.mrb[24].mxu1 %vm214_vm4, %v1762_v31 }
0x10e7   :  { %v3812_v52 = vpop.f32.mrb[22].mxu1  ;;  %v3834_v50 = vpop.f32.mrb[8].mxu0 }
0x10e8   :  { %v2032_v35 = vadd.f32 %v3834_v50, %v3454_v33  ;;  %v1848_v36 = vpop.f32.mrb[23].mxu1  ;;  %v2026_v37 = vpop.f32.mrb[9].mxu0  ;;  %v1854_v41 = vadd.f32 %v3812_v52, %v3438_v34 }
0x10e9   :  { %v1849_v39 = vadd.f32 %v3438_v34, %v1848_v36  ;;  %v2027_v40 = vadd.f32 %v3454_v33, %v2026_v37 }
0x10ea   :  { %v4989_v51 = vmul.f32 0.35355338, %v1854_v41 }
0x10eb   :  { %v4974_v42 = vmul.f32 0.35355338, %v1849_v39  ;;  %v4113_v43 = vpack.c.bf16 %v2032_v35, %v2027_v40  ;;  %v4976_v48 = vpack.i.bf16 %v2032_v35, %v2027_v40 }
0x10ed   :  { %4115 = vmatprep.subr.msk.bf16.mxu0 %vm4701_vm10, %v4113_v43  ;;  %2230 = vrot.lane.b32.xlu1 %v4974_v42, %s5304_s13 }
0x10ee   :  { %3839 = vmatprep.mubr.msk.f32.mxu1 %vm525_vm6, %v4974_v42  ;;  %4118 = vmatpush3.bf16.msk.msra.mxu0 %vm4701_vm10, %v4113_v43 }
0x10ef   :  { %v3823_v53 = vpop.f32.mrb[24].mxu1 }
0x10f0   :  { %v1944_v54 = vadd.f32 %v3823_v53, %v3446_v49  ;;  %v1938_v57 = vpop.f32.mrb[25].mxu1 }
0x10f1   :  { %v1939_v27 = vadd.f32 %v3446_v49, %v1938_v57  ;;  %2232 = vrot.lane.b32.xlu1 %v4989_v51, %s5304_s13 }
0x10f3   :  { %v4993_v28 = vpack.i.bf16 %v1944_v54, %v1939_v27  ;;  %v4107_v61 = vpack.c.bf16 %v1944_v54, %v1939_v27 }
0x10f5   :  { %4235 = vrot.lane.b32.xlu0 %v4993_v28, %s5304_s13  ;;  %4109 = vmatprep.subr.msk.bf16.mxu1 %vm4686_vm7, %v4107_v61 }
0x10f6   :  { %4112 = vmatpush3.bf16.xpose.msk.msra.mxu1 %vm4686_vm7, %v4107_v61 }
0x10fd   :  { %3840 = vmatmul.mubr.msk.f32.vlgmr.msra.gmra.mrb[26].mxu1 %vm525_vm6, %v4989_v51 }
0x115f   :  { %v2231_v62 = vpop.permute.xlu1 %2230 }
0x1160   :  { %3853 = vmatprep.mubr.msk.f32.mxu1 %vm525_vm6, %v2231_v62 }
0x1163   :  { %v2233_v2 = vpop.permute.xlu1 %2232 }
0x1167   :  { %v4236_v58 = vpop.permute.xlu0 %4235 }
0x1168   :  { %v4238_v63 = vunpack.i.h.bf16 %v4236_v58  ;;  %v4237_v0 = vunpack.i.l.bf16 %v4236_v58 }
0x116a   :  { %v4119_v1 = vpack.c.bf16 %v4238_v63, %v4237_v0 }
0x116c   :  { %4121 = vmatprep.subr.msk.bf16.mxu1 %vm4686_vm7, %v4119_v1 }
0x116d   :  { %4124 = vmatpush3.bf16.xpose.msk.msra.mxu1 %vm4686_vm7, %v4119_v1 }
0x1174   :  { %3854 = vmatmul.mubr.msk.f32.vlgmr.msra.gmra.mrb[28].mxu1 %vm525_vm6, %v2233_v2 }
0x11d0   :  { %v3841_v3 = vpop.f32.mrb[26].mxu1 }
0x11d1   :  { %v2119_v4 = vadd.f32 %v3841_v3, %v4716_v59  ;;  %v2113_v5 = vpop.f32.mrb[27].mxu1 }
0x11d2   :  { %v2114_v6 = vadd.f32 %v2113_v5, %v4721_v60 }
0x11d3   :  { %v2125_v7 = vsel %vm617_vm11, %v2119_v4, -inf }
0x11d4   :  { %2126 = vmax.xlane.f32.xlu0 %v2125_v7  ;;  %v2122_v8 = vsel %vm613_vm12, %v2114_v6, -inf }
0x11d5   :  { %2123 = vmax.xlane.f32.xlu1 %v2122_v8 }
0x11e6   :  { %4240 = vrot.lane.b32.xlu1 %v4976_v48, %s5304_s13  ;;  %s5309_s13 = smov 24  }
0x1247   :  { %v3855_v9 = vpop.f32.mrb[28].mxu1 }
0x1248   :  { %v2312_v10 = vpop.f32.mrb[29].mxu1  ;;  %v2318_v12 = vadd.f32 %v3855_v9, %v4716_v59  ;;  %v4357_v9 = vld [vmem:[%s5303_s10] sm:$0xff] }
0x1249   :  { %v2313_v11 = vadd.f32 %v2312_v10, %v4721_v60 }
0x124a   :  { %v2324_v14 = vsel %vm617_vm11, %v2318_v12, -inf }
0x124b   :  { %v2321_v13 = vsel %vm613_vm12, %v2313_v11, -inf }
0x124c   :  { %2322 = vmax.xlane.f32.xlu0 %v2321_v13 }
0x1250   :  { %2325 = vmax.xlane.f32.xlu0 %v2324_v14 }
0x1261   :  { %v2127_v15 = vpop.xlane.xlu0 %2126 }
0x1262   :  { %v2129_v16 = vsub.f32 %v2119_v4, %v2127_v15  ;;  %v2124_v17 = vpop.xlane.xlu1 %2123 }
0x1263   :  { %v2128_v18 = vsub.f32 %v2114_v6, %v2124_v17  ;;  %v4356_v6 = vld [vmem:[%s5303_s10 + $0x8] sm:$0x3]  ;;  %s5307_s10 = smov 8  }
0x1264   :  { %v2132_v19 = vmul.f32 1.442695, %v2129_v16 }
0x1265   :  { %v2130_v46 = vmul.f32 1.442695, %v2128_v18 }
0x1266   :  { %4312 = vpow2.f32 %v2132_v19  ;;  %v4241_v20 = vpop.permute.xlu1 %4240 }
0x1267   :  { %4314 = vpow2.f32 %v2130_v46  ;;  %v4243_v38 = vunpack.i.h.bf16 %v4241_v20  ;;  %v4242_v55 = vunpack.i.l.bf16 %v4241_v20 }
0x1269   :  { %v4125_v60 = vpack.c.bf16 %v4243_v38, %v4242_v55 }
0x126b   :  { %4127 = vmatprep.subr.msk.bf16.mxu0 %vm4701_vm10, %v4125_v60 }
0x1270   :  { %v4313_v59 = vpop.eup %4312 }
0x1271   :  { %v4315_v21 = vpop.eup %4314  ;;  %v2137_v22 = vsel %vm617_vm11, %v4313_v59, 0.0 }
0x1272   :  { %2138 = vadd.xlane.f32.xlu0 %v2137_v22  ;;  %v2134_v23 = vsel %vm613_vm12, %v4315_v21, 0.0 }
0x1273   :  { %2135 = vadd.xlane.f32.xlu1 %v2134_v23 }
0x1284   :  { %2442 = vrot.lane.b32.xlu1 %v4974_v42, %s5305_s11 }
0x12d9   :  { %v2323_v24 = vpop.xlane.xlu0 %2322 }
0x12da   :  { %v2327_v25 = vsub.f32 %v2313_v11, %v2323_v24 }
0x12dc   :  { %v2329_v26 = vmul.f32 1.442695, %v2327_v25 }
0x12dd   :  { %v2326_v29 = vpop.xlane.xlu0 %2325 }
0x12de   :  { %4316 = vpow2.f32 %v2329_v26  ;;  %v2328_v30 = vsub.f32 %v2318_v12, %v2326_v29 }
0x12e0   :  { %v2331_v31 = vmul.f32 1.442695, %v2328_v30 }
0x12e2   :  { %4318 = vpow2.f32 %v2331_v31 }
0x12e8   :  { %v4317_v32 = vpop.eup %4316 }
0x12e9   :  { %v2333_v33 = vsel %vm613_vm12, %v4317_v32, 0.0 }
0x12ea   :  { %2334 = vadd.xlane.f32.xlu1 %v2333_v33 }
0x12ec   :  { %v4319_v34 = vpop.eup %4318 }
0x12ed   :  { %v2336_v52 = vsel %vm617_vm11, %v4319_v34, 0.0 }
0x12ee   :  { %2337 = vadd.xlane.f32.xlu0 %v2336_v52 }
0x12fb   :  { %2444 = vrot.lane.b32.xlu1 %v4989_v51, %s5305_s11 }
0x12ff   :  { %v2139_v50 = vpop.xlane.xlu0 %2138 }
0x1300   :  { %4320 = vrcp.f32 %v2139_v50  ;;  %v2136_v35 = vpop.xlane.xlu1 %2135 }
0x1301   :  { %4322 = vrcp.f32 %v2136_v35 }
0x1304   :  { %4245 = vrot.lane.b32.xlu0 %v4993_v28, %s5305_s11  ;;  %v2443_v41 = vpop.permute.xlu1 %2442 }
0x130a   :  { %v4321_v36 = vpop.eup %4320 }
0x130b   :  { %v4323_v37 = vpop.eup %4322  ;;  %v2143_v40 = vmul.f32 %v4321_v36, %v4313_v59 }
0x130c   :  { %v2142_v39 = vmul.f32 %v4323_v37, %v4315_v21 }
0x130e   :  { %3846 = vmatprep.mubr.msk.f32.mxu0 %vm613_vm12, %v2142_v39 }
0x130f   :  { %3847 = vmatmul.mubr.msk.f32.vlgmr.msra.gmra.mrb[10].mxu0 %vm613_vm12, %v2143_v40 }
0x1310   :  { %4130 = vmatpush3.bf16.msk.msra.mxu0 %vm4701_vm10, %v4125_v60 }
0x1377   :  { %v2335_v43 = vpop.xlane.xlu1 %2334 }
0x1378   :  { %4324 = vrcp.f32 %v2335_v43 }
0x137b   :  { %v2338_v49 = vpop.xlane.xlu0 %2337  ;;  %v2445_v0 = vpop.permute.xlu1 %2444 }
0x137c   :  { %4326 = vrcp.f32 %v2338_v49 }
0x137f   :  { %v4246_v53 = vpop.permute.xlu0 %4245 }
0x1380   :  { %v4248_v54 = vunpack.i.h.bf16 %v4246_v53  ;;  %v4247_v57 = vunpack.i.l.bf16 %v4246_v53 }
0x1382   :  { %v4325_v27 = vpop.eup %4324  ;;  %v4131_v61 = vpack.c.bf16 %v4248_v54, %v4247_v57 }
0x1383   :  { %v2341_v62 = vmul.f32 %v4325_v27, %v4317_v32 }
0x1384   :  { %4133 = vmatprep.subr.msk.bf16.mxu0 %vm4686_vm7, %v4131_v61 }
0x1385   :  { %3860 = vmatprep.mubr.msk.f32.mxu0 %vm613_vm12, %v2341_v62 }
0x1386   :  { %v4327_v58 = vpop.eup %4326 }
0x1387   :  { %v2342_v63 = vmul.f32 %v4327_v58, %v4319_v34 }
0x1389   :  { %3861 = vmatmul.mubr.msk.f32.vlgmr.msra.gmra.mrb[12].mxu0 %vm613_vm12, %v2342_v63 }
0x138a   :  { %4136 = vmatpush3.bf16.xpose.msk.msra.mxu0 %vm4686_vm7, %v4131_v61  ;;  %3867 = vmatprep.mubr.msk.f32.mxu0 %vm525_vm6, %v2443_v41 }
0x1391   :  { %3868 = vmatmul.mubr.msk.f32.vlgmr.msra.gmra.mrb[14].mxu0 %vm525_vm6, %v2445_v0 }
0x13e2   :  { %v3848_v1 = vpop.f32.mrb[10].mxu0 }
0x13e3   :  { %2229 = vst.msk [vmem:[#allocation3 + $0x8] sm:$0x3] %vm723_vm13, %v3848_v1  ;;  %v2219_v2 = vpop.f32.mrb[11].mxu0 }
0x13e4   :  { %2228 = vst.msk [vmem:[#allocation3] sm:$0xff] %vm525_vm6, %v2219_v2 }
0x145c   :  { %v5045_v3 = vpop.f32.mrb[12].mxu0 }
0x145d   :  { %v5047_v4 = vpop.f32.mrb[13].mxu0 }
0x1464   :  { %v3869_v5 = vpop.f32.mrb[14].mxu0 }
0x1465   :  { %v2530_v7 = vadd.f32 %v4356_v6, %v3869_v5  ;;  %v2524_v8 = vpop.f32.mrb[15].mxu0 }
0x1466   :  { %v2525_v10 = vadd.f32 %v4357_v9, %v2524_v8 }
0x1467   :  { %v2536_v11 = vsel %vm617_vm11, %v2530_v7, -inf }
0x1468   :  { %2537 = vmax.xlane.f32.xlu0 %v2536_v11  ;;  %v2533_v12 = vsel %vm613_vm12, %v2525_v10, -inf }
0x1469   :  { %2534 = vmax.xlane.f32.xlu1 %v2533_v12  ;;  %v3487_v12 = vld [vmem:[%s5243_s14 + $0x30] sm:$0xff] }
0x147a   :  { %4250 = vrot.lane.b32.xlu1 %v4976_v48, %s5305_s11 }
0x147e   :  { %2653 = vrot.lane.b32.xlu1 %v4974_v42, %s5306_s1 }
0x1482   :  { %2655 = vrot.lane.b32.xlu1 %v4989_v51, %s5306_s1 }
0x14f5   :  { %v2538_v13 = vpop.xlane.xlu0 %2537 }
0x14f6   :  { %v2540_v14 = vsub.f32 %v2530_v7, %v2538_v13  ;;  %v2535_v15 = vpop.xlane.xlu1 %2534  ;;  %v3488_v13 = vld [vmem:[%s5243_s14 + $0x38] sm:$0xff] }
0x14f7   :  { %v2539_v16 = vsub.f32 %v2525_v10, %v2535_v15  ;;  %v3486_v10 = vld [vmem:[%s5243_s14 + $0x28] sm:$0xff] }
0x14f8   :  { %v2543_v17 = vmul.f32 1.442695, %v2540_v14  ;;  %v4159_v14 = vpack.c.bf16 %v3488_v13, %v3487_v12 }
0x14f9   :  { %v2541_v18 = vmul.f32 1.442695, %v2539_v16 }
0x14fa   :  { %4328 = vpow2.f32 %v2543_v17  ;;  %v4251_v19 = vpop.permute.xlu1 %4250 }
0x14fb   :  { %v4253_v46 = vunpack.i.h.bf16 %v4251_v19  ;;  %v4252_v20 = vunpack.i.l.bf16 %v4251_v19  ;;  %4330 = vpow2.f32 %v2541_v18 }
0x14fd   :  { %v4137_v38 = vpack.c.bf16 %v4253_v46, %v4252_v20 }
0x14fe   :  { %v2654_v32 = vpop.permute.xlu1 %2653 }
0x14ff   :  { %4139 = vmatprep.subr.msk.bf16.mxu1 %vm4701_vm10, %v4137_v38 }
0x1500   :  { %4142 = vmatpush3.bf16.msk.msra.mxu1 %vm4701_vm10, %v4137_v38  ;;  %v3492_v38 = vld [vmem:[%s5244_s15 + $0x1] ss:$0 sm:$0xff] }
0x1504   :  { %v4329_v42 = vpop.eup %4328 }
0x1505   :  { %v2548_v51 = vsel %vm617_vm11, %v4329_v42, 0.0  ;;  %v4331_v55 = vpop.eup %4330 }
0x1506   :  { %2549 = vadd.xlane.f32.xlu0 %v2548_v51  ;;  %v2545_v60 = vsel %vm613_vm12, %v4331_v55, 0.0 }
0x150a   :  { %2546 = vadd.xlane.f32.xlu0 %v2545_v60 }
0x1520   :  { %4255 = vrot.lane.b32.xlu0 %v4993_v28, %s5306_s1  ;;  %v2656_v28 = vpop.permute.xlu1 %2655 }
0x1593   :  { %v2550_v59 = vpop.xlane.xlu0 %2549 }
0x1594   :  { %4332 = vrcp.f32 %v2550_v59 }
0x1597   :  { %v2547_v21 = vpop.xlane.xlu0 %2546 }
0x1598   :  { %4334 = vrcp.f32 %v2547_v21 }
0x159b   :  { %v4256_v22 = vpop.permute.xlu0 %4255 }
0x159c   :  { %v4258_v23 = vunpack.i.h.bf16 %v4256_v22  ;;  %v4257_v24 = vunpack.i.l.bf16 %v4256_v22 }
0x159e   :  { %v4143_v25 = vpack.c.bf16 %v4258_v23, %v4257_v24  ;;  %v4333_v26 = vpop.eup %4332 }
0x159f   :  { %v2554_v31 = vmul.f32 %v4333_v26, %v4329_v42 }
0x15a0   :  { %4145 = vmatprep.subr.msk.bf16.mxu1 %vm4686_vm7, %v4143_v25 }
0x15a2   :  { %v4335_v29 = vpop.eup %4334 }
0x15a3   :  { %v2553_v30 = vmul.f32 %v4335_v29, %v4331_v55 }
0x15a5   :  { %3874 = vmatprep.mubr.msk.f32.mxu1 %vm613_vm12, %v2553_v30 }
0x15a6   :  { %3875 = vmatmul.mubr.msk.f32.vlgmr.msra.gmra.mrb[30].mxu1 %vm613_vm12, %v2554_v31 }
0x15a7   :  { %4148 = vmatpush3.bf16.xpose.msk.msra.mxu1 %vm4686_vm7, %v4143_v25  ;;  %3881 = vmatprep.mubr.msk.f32.mxu1 %vm525_vm6, %v2654_v32 }
0x15ae   :  { %3882 = vmatmul.mubr.msk.f32.vlgmr.msra.gmra.mrb[32].mxu1 %vm525_vm6, %v2656_v28  ;;  %v3497_v28 = vld [vmem:[%s5247_s18 + $0x20] sm:$0xff] }
0x1679   :  { %v3876_v33 = vpop.f32.mrb[30].mxu1 }
0x167a   :  { %v2634_v34 = vpop.f32.mrb[31].mxu1 }
0x1681   :  { %v3883_v52 = vpop.f32.mrb[32].mxu1 }
0x1682   :  { %v2741_v50 = vadd.f32 %v4356_v6, %v3883_v52  ;;  %v2735_v35 = vpop.f32.mrb[33].mxu1  ;;  %v3499_v52 = vld [vmem:[%s5247_s18 + $0x30] sm:$0xff] }
0x1683   :  { %v2736_v36 = vadd.f32 %v4357_v9, %v2735_v35 }
0x1684   :  { %v2747_v37 = vsel %vm617_vm11, %v2741_v50, -inf }
0x1685   :  { %2748 = vmax.xlane.f32.xlu0 %v2747_v37  ;;  %v2744_v39 = vsel %vm613_vm12, %v2736_v36, -inf }
0x1686   :  { %2745 = vmax.xlane.f32.xlu1 %v2744_v39 }
0x1697   :  { %4260 = vrot.lane.b32.xlu1 %v4976_v48, %s5306_s1 }
0x169b   :  { %2436 = vrot.lane.b32.xlu1 %v5045_v3, %s5307_s10 }
0x169f   :  { %2645 = vrot.lane.b32.xlu1 %v2634_v34, %s5308_s27 }
0x16a3   :  { %2647 = vrot.lane.b32.xlu1 %v3876_v33, %s5308_s27  ;;  %v3498_v33 = vld [vmem:[%s5247_s18 + $0x28] sm:$0xff] }
0x16a4   :  { %v4163_v34 = vpack.c.bf16 %v3498_v33, %v3497_v28 }
0x16a6   :  { %4164 = vmatprep.subr.bf16.mxu1 %v4163_v34 }
0x16a7   :  { %4166 = vmatpush3.bf16.msra.mxu1 %v4163_v34 }
0x1712   :  { %v2749_v44 = vpop.xlane.xlu0 %2748 }
0x1713   :  { %v2751_v40 = vsub.f32 %v2741_v50, %v2749_v44  ;;  %v2746_v41 = vpop.xlane.xlu1 %2745  ;;  %v3500_v50 = vld [vmem:[%s5247_s18 + $0x38] sm:$0xff] }
0x1714   :  { %v2750_v43 = vsub.f32 %v2736_v36, %v2746_v41  ;;  %v4167_v35 = vpack.c.bf16 %v3500_v50, %v3499_v52 }
0x1715   :  { %v2754_v49 = vmul.f32 1.442695, %v2751_v40 }
0x1716   :  { %v2752_v53 = vmul.f32 1.442695, %v2750_v43  ;;  %4168 = vmatprep.subr.bf16.mxu1 %v4167_v35 }
0x1717   :  { %v4261_v54 = vpop.permute.xlu1 %4260  ;;  %4170 = vmatpush3.bf16.msra.mxu1 %v4167_v35 }
0x1718   :  { %4336 = vpow2.f32 %v2752_v53  ;;  %v4263_v57 = vunpack.i.h.bf16 %v4261_v54  ;;  %v4262_v27 = vunpack.i.l.bf16 %v4261_v54  ;;  %v3496_v54 = vld [vmem:[%s5246_s17 + $0x1] ss:$0 sm:$0xff] }
0x1719   :  { %4338 = vpow2.f32 %v2754_v49  ;;  %v3495_v49 = vld [vmem:[%s5245_s16 + $0x1] ss:$0 sm:$0xff] }
0x171a   :  { %v4149_v61 = vpack.c.bf16 %v4263_v57, %v4262_v27 }
0x171b   :  { %v2437_v48 = vpop.permute.xlu1 %2436 }
0x171c   :  { %2441 = vst.msk [vmem:[#allocation3 + $0x8] sm:$0x3] %vm937_vm14, %v2437_v48  ;;  %4151 = vmatprep.subr.msk.bf16.mxu0 %vm4701_vm10, %v4149_v61 }
0x171d   :  { %4154 = vmatpush3.bf16.msk.msra.mxu0 %vm4701_vm10, %v4149_v61 }
0x171f   :  { %v2646_v62 = vpop.permute.xlu1 %2645 }
0x1722   :  { %v4337_v58 = vpop.eup %4336 }
0x1723   :  { %v2648_v63 = vpop.permute.xlu1 %2647  ;;  %v2756_v0 = vsel %vm613_vm12, %v4337_v58, 0.0  ;;  %v4339_v1 = vpop.eup %4338 }
0x1724   :  { %2652 = vst.msk [vmem:[#allocation3 + $0x8] sm:$0x3] %vm1150_vm15, %v2648_v63  ;;  %2757 = vadd.xlane.f32.xlu0 %v2756_v0  ;;  %v2759_v2 = vsel %vm617_vm11, %v4339_v1, 0.0  ;;  %v3505_v63 = vld [vmem:[%s5249_s20 + $0x40] sm:$0xff]  ;;  %v3506_v0 = vld [vmem:[%s5249_s20 + $0x48] sm:$0xff] }
0x1728   :  { %2760 = vadd.xlane.f32.xlu0 %v2759_v2  ;;  %v3507_v2 = vld [vmem:[%s5249_s20 + $0x50] sm:$0xff] }
0x173e   :  { %2434 = vrot.lane.b32.xlu0 %v5047_v4, %s5307_s10  ;;  %v3485_v4 = vld [vmem:[%s5243_s14 + $0x20] sm:$0xff] }
0x173f   :  { %v4155_v11 = vpack.c.bf16 %v3486_v10, %v3485_v4  ;;  %v3502_v10 = vld [vmem:[%s5248_s19 + $0x1] ss:$0 sm:$0xff] }
0x1741   :  { %4156 = vmatprep.subr.bf16.mxu0 %v4155_v11 }
0x17b1   :  { %v2758_v3 = vpop.xlane.xlu0 %2757 }
0x17b2   :  { %4340 = vrcp.f32 %v2758_v3  ;;  %v3508_v3 = vld [vmem:[%s5249_s20 + $0x58] sm:$0xff] }
0x17b5   :  { %v2761_v5 = vpop.xlane.xlu0 %2760 }
0x17b6   :  { %4342 = vrcp.f32 %v2761_v5  ;;  %v3509_v5 = vld [vmem:[%s5249_s20 + $0x60] sm:$0xff] }
0x17b9   :  { %v2435_v56 = vpop.permute.xlu0 %2434 }
0x17ba   :  { %2440 = vst.msk [vmem:[#allocation3] sm:$0xff] %vm935_vm1, %v2435_v56  ;;  %v4175_v56 = vpack.c.bf16 %v3508_v3, %v3507_v2  ;;  %v3517_v2 = vld [vmem:[%s5251_s22] ss:$0 sm:$0xff]  ;;  %s4390_s22 = smov [#allocation4]  }
0x17bb   :  { %2651 = vst.msk [vmem:[#allocation3] sm:$0xff] %vm1148_vm2, %v2646_v62  ;;  %s3369_s29 = sshll.u32 %s4390_s22, 4  ;;  %s3370_s29 = int_to_ptr.vmem [resolvable:$true] %s3369_s29 }
0x17bc   :  { %v4341_v6 = vpop.eup %4340  ;;  %p4363_p1 = scmp.lt.s32.totalorder %s3370_s29, %s3370_s29 }
0x17bd   :  { %v2764_v7 = vmul.f32 %v4341_v6, %v4337_v58  ;;  %v3510_v6 = vld [vmem:[%s5249_s20 + $0x68] sm:$0xff] }
0x17bf   :  { %3888 = vmatprep.mubr.msk.f32.mxu0 %vm613_vm12, %v2764_v7  ;;  %v4179_v7 = vpack.c.bf16 %v3510_v6, %v3509_v5  ;;  %v3518_v6 = vld [vmem:[%s5252_s23] ss:$0 sm:$0xff]  ;;  %s4358_s23 = scalar_lea.vmem %s3370_s29, 32 }
0x17c0   :  { %v4343_v8 = vpop.eup %4342  ;;  %p4359_p0 = scmp.ne.s32.totalorder %s3370_s29, %s4358_s23  ;;  %p4364_p2 = scmp.lt.s32.totalorder %s4358_s23, %s4358_s23 }
0x17c1   :  { %v2765_v9 = vmul.f32 %v4343_v8, %v4339_v1  ;;  %v4171_v1 = vpack.c.bf16 %v3506_v0, %v3505_v63  ;;  %v3511_v8 = vld [vmem:[%s5249_s20 + $0x70] sm:$0xff] }
0x17c2   :  { %p4365_p3 = por %p4364_p2, %p4363_p1 }
0x17c3   :  { %3889 = vmatmul.mubr.msk.f32.vlgmr.msra.gmra.mrb[16].mxu0 %vm613_vm12, %v2765_v9  ;;  %v3512_v9 = vld [vmem:[%s5249_s20 + $0x78] sm:$0xff] }
0x17c4   :  { %4158 = vmatpush3.bf16.msra.mxu0 %v4155_v11  ;;  %v4183_v4 = vpack.c.bf16 %v3512_v9, %v3511_v8  ;;  %p4366_p4 = pnand %p4365_p3, %p4359_p0 }
0x17c5   :  { %4160 = vmatprep.subr.bf16.mxu0 %v4159_v14 }
0x17c8   :  { %4162 = vmatpush3.bf16.msra.mxu0 %v4159_v14 }
0x17c9   :  { %4172 = vmatprep.subr.bf16.mxu0 %v4171_v1 }
0x1896   :  { %v3890_v15 = vpop.f32.mrb[16].mxu0 }
0x1897   :  { %2858 = vrot.lane.b32.xlu1 %v3890_v15, %s5309_s13  ;;  %v2845_v16 = vpop.f32.mrb[17].mxu0 }
0x1898   :  { %2856 = vrot.lane.b32.xlu0 %v2845_v16, %s5309_s13 }
0x1909   :  { %v2859_v17 = vpop.permute.xlu1 %2858 }
0x190a   :  { %2863 = vst.msk [vmem:[#allocation3 + $0x8] sm:$0x3] %vm1363_vm3, %v2859_v17  ;;  %v2857_v18 = vpop.permute.xlu0 %2856 }
0x190b   :  { %2862 = vst.msk [vmem:[#allocation3] sm:$0xff] %vm1361_vm8, %v2857_v18 }
0x1911   :  { %v2865_v46 = vld [vmem:[#allocation3 + $0x8] sm:$0x3] }
0x1912   :  { %v2864_v19 = vld [vmem:[#allocation3] sm:$0xff] }
0x1913   :  { %3899 = vmatprep.mubr.msk.f32.mxu0 %vm214_vm4, %v2864_v19 }
0x1914   :  { %3900 = vmatmul.mubr.msk.f32.vlgmr.msra.gmra.mrb[18].mxu0 %vm214_vm4, %v2865_v46 }
0x1915   :  { %4174 = vmatpush3.bf16.msra.mxu0 %v4171_v1 }
0x1916   :  { %4176 = vmatprep.subr.bf16.mxu0 %v4175_v56 }
0x1919   :  { %4178 = vmatpush3.bf16.msra.mxu0 %v4175_v56 }
0x191a   :  { %4180 = vmatprep.subr.bf16.mxu0 %v4179_v7 }
0x191d   :  { %4182 = vmatpush3.bf16.msra.mxu0 %v4179_v7 }
0x191e   :  { %4184 = vmatprep.subr.bf16.mxu0 %v4183_v4 }
0x1921   :  { %4186 = vmatpush3.bf16.msra.mxu0 %v4183_v4 }
0x19e7   :  { %v3901_v20 = vpop.f32.mrb[18].mxu0 }
0x19e8   :  { %v2953_v42 = vadd.f32 %v3901_v20, %v4908_v45  ;;  %v2943_v51 = vpop.f32.mrb[19].mxu0 }
0x19e9   :  { %v2952_v55 = vadd.f32 %v2943_v51, %v4910_v47 }
0x19ea   :  { %v5124_v60 = vadd.f32 %v3492_v38, %v2953_v42 }
0x19eb   :  { %v5126_v59 = vadd.f32 %v3492_v38, %v2952_v55 }
0x19ec   :  { %v2971_v21 = vsel %vm218_vm5, %v5124_v60, 0.0 }
0x19ed   :  { %2972 = vadd.xlane.f32.xlu1 %v2971_v21  ;;  %v2968_v22 = vsel %vm214_vm4, %v5126_v59, 0.0 }
0x19ee   :  { %2969 = vadd.xlane.f32.xlu0 %v2968_v22 }
0x1a7a   :  { %v2973_v23 = vpop.xlane.xlu1 %2972 }
0x1a7b   :  { %v2975_v24 = vmul.f32 0.03125, %v2973_v23  ;;  %v2970_v25 = vpop.xlane.xlu0 %2969 }
0x1a7c   :  { %v2974_v26 = vmul.f32 0.03125, %v2970_v25 }
0x1a7d   :  { %v2977_v45 = vsub.f32 %v5124_v60, %v2975_v24 }
0x1a7e   :  { %v2976_v47 = vsub.f32 %v5126_v59, %v2974_v26 }
0x1a7f   :  { %v2979_v31 = vmul.f32 %v2977_v45, %v2977_v45 }
0x1a80   :  { %v2978_v29 = vmul.f32 %v2976_v47, %v2976_v47 }
0x1a81   :  { %v2983_v32 = vsel %vm218_vm5, %v2979_v31, 0.0 }
0x1a82   :  { %v2980_v30 = vsel %vm214_vm4, %v2978_v29, 0.0  ;;  %v3516_v29 = vld [vmem:[%s5250_s21 + $0x1] ss:$0 sm:$0xff] }
0x1a83   :  { %2981 = vadd.xlane.f32.xlu0 %v2980_v30 }
0x1a87   :  { %2984 = vadd.xlane.f32.xlu0 %v2983_v32 }
0x1b10   :  { %v2982_v36 = vpop.xlane.xlu0 %2981 }
0x1b11   :  { %v2986_v37 = vmul.f32 0.03125, %v2982_v36 }
0x1b13   :  { %v2988_v39 = vadd.f32 1e-12, %v2986_v37 }
0x1b14   :  { %v2985_v44 = vpop.xlane.xlu0 %2984 }
0x1b15   :  { %4344 = vrsqrt.f32 %v2988_v39  ;;  %v2987_v40 = vmul.f32 0.03125, %v2985_v44 }
0x1b17   :  { %v2989_v41 = vadd.f32 1e-12, %v2987_v40 }
0x1b19   :  { %4346 = vrsqrt.f32 %v2989_v41 }
0x1b1f   :  { %v4345_v43 = vpop.eup %4344 }
0x1b20   :  { %v2992_v53 = vmul.f32 %v4345_v43, %v2976_v47  ;;  %v3268_v43 = vld [vmem:[%s5253_s24] sm:$0xff] }
0x1b22   :  { %v3000_v57 = vmul.f32 %v3495_v49, %v2992_v53 }
0x1b23   :  { %v4347_v27 = vpop.eup %4346 }
0x1b24   :  { %v2993_v61 = vmul.f32 %v4347_v27, %v2977_v45  ;;  %v3008_v48 = vadd.f32 %v3496_v54, %v3000_v57  ;;  %v3271_v57 = vld [vmem:[%s5253_s24 + $0x18] sm:$0xff] }
0x1b26   :  { %v3001_v62 = vmul.f32 %v3495_v49, %v2993_v61  ;;  %3910 = vmatprep.mubr.msk.f32.mxu1 %vm214_vm4, %v3008_v48  ;;  %v3269_v49 = vld [vmem:[%s5253_s24 + $0x8] sm:$0xff] }
0x1b27   :  { %v4187_v53 = vpack.c.bf16 %v3269_v49, %v3268_v43 }
0x1b28   :  { %v3009_v58 = vadd.f32 %v3496_v54, %v3001_v62  ;;  %v3270_v54 = vld [vmem:[%s5253_s24 + $0x10] sm:$0xff] }
0x1b29   :  { %4188 = vmatprep.subr.bf16.mxu1 %v4187_v53  ;;  %v4191_v27 = vpack.c.bf16 %v3271_v57, %v3270_v54 }
0x1b2a   :  { %3911 = vmatmul.mubr.msk.f32.vlgmr.msra.gmra.mrb[34].mxu1 %vm214_vm4, %v3009_v58 }
0x1b2b   :  { %4190 = vmatpush3.bf16.msra.mxu1 %v4187_v53 }
0x1b2c   :  { %4192 = vmatprep.subr.bf16.mxu1 %v4191_v27 }
0x1b2f   :  { %4194 = vmatpush3.bf16.msra.mxu1 %v4191_v27 }
0x1bfd   :  { %v3912_v11 = vpop.f32.mrb[34].mxu1 }
0x1bfe   :  { %v3101_v12 = vadd.f32 %v3912_v11, %v3502_v10  ;;  %v3095_v13 = vpop.f32.mrb[35].mxu1 }
0x1bff   :  { %v3096_v14 = vadd.f32 %v3502_v10, %v3095_v13  ;;  %v3519_v10 = vld [vmem:[%s5254_s25] ss:$0 sm:$0xff] }
0x1c00   :  { %v3107_v15 = vmul.f32 0.044715, %v3101_v12  ;;  %v3105_v25 = vmul.f32 0.5, %v3101_v12 }
0x1c01   :  { %v3106_v16 = vmul.f32 0.044715, %v3096_v14  ;;  %v3104_v23 = vmul.f32 0.5, %v3096_v14 }
0x1c02   :  { %v3109_v17 = vmul.f32 %v3107_v15, %v3101_v12 }
0x1c03   :  { %v3108_v18 = vmul.f32 %v3106_v16, %v3096_v14 }
0x1c04   :  { %v3111_v19 = vmul.f32 %v3109_v17, %v3101_v12 }
0x1c05   :  { %v3110_v46 = vmul.f32 %v3108_v18, %v3096_v14 }
0x1c06   :  { %v3113_v20 = vadd.f32 %v3111_v19, %v3101_v12 }
0x1c07   :  { %v3112_v38 = vadd.f32 %v3110_v46, %v3096_v14 }
0x1c08   :  { %v3115_v42 = vmul.f32 0.7978846, %v3113_v20 }
0x1c09   :  { %v3114_v51 = vmul.f32 0.7978846, %v3112_v38 }
0x1c0a   :  { %4348 = vtanh.f32 %v3115_v42 }
0x1c0b   :  { %4350 = vtanh.f32 %v3114_v51 }
0x1c14   :  { %v4349_v55 = vpop.eup %4348 }
0x1c15   :  { %v4351_v21 = vpop.eup %4350  ;;  %v3119_v22 = vadd.f32 1.0, %v4349_v55 }
0x1c16   :  { %v3118_v24 = vadd.f32 1.0, %v4351_v21 }
0x1c17   :  { %v3121_v45 = vmul.f32 %v3119_v22, %v3105_v25 }
0x1c18   :  { %v3120_v26 = vmul.f32 %v3118_v24, %v3104_v23 }
0x1c1a   :  { %3929 = vmatprep.mubr.msk.f32.mxu0 %vm117_vm0, %v3120_v26 }
0x1c1b   :  { %3930 = vmatmul.mubr.msk.f32.vlgmr.msra.gmra.mrb[20].mxu0 %vm117_vm0, %v3121_v45  ;;  %vm3359_vm0 = vcmask 73728  }
0x1cee   :  { %v3931_v47 = vpop.f32.mrb[20].mxu0 }
0x1cef   :  { %v3213_v30 = vadd.f32 %v3931_v47, %v5124_v60  ;;  %v3203_v31 = vpop.f32.mrb[21].mxu0 }
0x1cf0   :  { %v3212_v32 = vadd.f32 %v3203_v31, %v5126_v59 }
0x1cf1   :  { %v3223_v28 = vadd.f32 %v3516_v29, %v3213_v30 }
0x1cf2   :  { %v3222_v33 = vadd.f32 %v3516_v29, %v3212_v32 }
0x1cf3   :  { %v3229_v34 = vsel %vm218_vm5, %v3223_v28, 0.0 }
0x1cf4   :  { %3230 = vadd.xlane.f32.xlu1 %v3229_v34  ;;  %v3226_v52 = vsel %vm214_vm4, %v3222_v33, 0.0 }
0x1cf5   :  { %3227 = vadd.xlane.f32.xlu0 %v3226_v52 }
0x1d81   :  { %v3231_v50 = vpop.xlane.xlu1 %3230 }
0x1d82   :  { %v3233_v35 = vmul.f32 0.03125, %v3231_v50  ;;  %v3228_v36 = vpop.xlane.xlu0 %3227 }
0x1d83   :  { %v3232_v37 = vmul.f32 0.03125, %v3228_v36 }
0x1d84   :  { %v3235_v39 = vsub.f32 %v3223_v28, %v3233_v35 }
0x1d85   :  { %v3234_v44 = vsub.f32 %v3222_v33, %v3232_v37 }
0x1d86   :  { %v3237_v40 = vmul.f32 %v3235_v39, %v3235_v39 }
0x1d87   :  { %v3236_v41 = vmul.f32 %v3234_v44, %v3234_v44 }
0x1d88   :  { %v3241_v60 = vsel %vm218_vm5, %v3237_v40, 0.0  ;;  %vm3361_vm5 = vcmask 78853  }
0x1d89   :  { %3242 = vadd.xlane.f32.xlu1 %v3241_v60  ;;  %v3238_v59 = vsel %vm214_vm4, %v3236_v41, 0.0 }
0x1d8a   :  { %3239 = vadd.xlane.f32.xlu0 %v3238_v59 }
0x1e16   :  { %v3243_v61 = vpop.xlane.xlu1 %3242 }
0x1e17   :  { %v3245_v48 = vmul.f32 0.03125, %v3243_v61  ;;  %v3240_v62 = vpop.xlane.xlu0 %3239 }
0x1e18   :  { %v3244_v58 = vmul.f32 0.03125, %v3240_v62 }
0x1e19   :  { %v3247_v63 = vadd.f32 1e-12, %v3245_v48 }
0x1e1a   :  { %v3246_v0 = vadd.f32 1e-12, %v3244_v58 }
0x1e1b   :  { %4352 = vrsqrt.f32 %v3247_v63 }
0x1e1c   :  { %4354 = vrsqrt.f32 %v3246_v0 }
0x1e25   :  { %v4353_v1 = vpop.eup %4352 }
0x1e26   :  { %v4355_v3 = vpop.eup %4354  ;;  %v3251_v5 = vmul.f32 %v4353_v1, %v3235_v39 }
0x1e27   :  { %v3250_v56 = vmul.f32 %v4355_v3, %v3234_v44 }
0x1e28   :  { %v3259_v7 = vmul.f32 %v3517_v2, %v3251_v5 }
0x1e29   :  { %v3258_v8 = vmul.f32 %v3517_v2, %v3250_v56 }
0x1e2a   :  { %v3267_v4 = vadd.f32 %v3518_v6, %v3259_v7 }
0x1e2b   :  { %v3266_v9 = vadd.f32 %v3518_v6, %v3258_v8 }
0x1e2d   :  { %3940 = vmatprep.mubr.msk.f32.mxu1 %vm214_vm4, %v3266_v9 }
0x1e2e   :  { %3941 = vmatmul.mubr.msk.f32.vlgmr.msra.gmra.mrb[36].mxu1 %vm214_vm4, %v3267_v4 }
0x1f01   :  { %v3942_v11 = vpop.f32.mrb[36].mxu1 }
0x1f02   :  { %v3351_v12 = vpop.f32.mrb[37].mxu1 }
0x1f03   :  { %v3352_v13 = vadd.f32 %v3519_v10, %v3351_v12 }
0x1f05   :  { %3360 = vst.msk [vmem:[#allocation4] sm:$0x1] %vm3359_vm0, %v3352_v13 }
0x1f06   :  { %3362 = vst.msk [vmem:[#allocation4 - $0x4] sm:$0x20] %vm3361_vm5, %v3352_v13 }
0x1f07   :  { %4369 = shalt.err (!%p4366_p4)
}
0x1f08   :  { %s5310_s25 = sld [smem:[#allocation18_spill]] }
0x1f0e   :  { %s4370_s13 = scalar_lea.hbm %s5310_s25, 32 }
0x1f0f   :  { %p4371_p5 = scmp.ne.s32.totalorder %s5310_s25, %s4370_s13  ;;  %p4374_p6 = scmp.lt.u32.totalorder %s4370_s13, %s5310_s25 }
0x1f11   :  { %p4376_p7 = pnand %p4374_p6, %p4371_p5 }
0x1f13   :  { %4379 = shalt.err (!%p4376_p7)
}
0x1f14   :  { %3372 = dma.vmem_to_hbm [thread:$0]  %s3370_s29, 32, %s5310_s25, [#allocation5]  }
0x1f15   :  { %4380 = dma.done.wait [#allocation5], 32  }
0x1f16   :  { %4381 = vsyncadd [#allocation5], 4294967264 }
0x1f17   :  { %3376 = vsyncpa [#allocation5], 1 }

</bundles_post_ra>
